<compile_context>
chip_gen: v5e
topology: v5e:2x2
jax: 0.10.0
libtpu: 0.0.40
codegen_flags: <defaults>
</compile_context>

<pallas_src>
import functools

import jax
import jax.numpy as jnp
from jax.experimental import pallas as pl
from jax.experimental.pallas import tpu as pltpu

EPS = 1e-5


# ----------------------------------------------------------------------------
# Pallas kernel: one fused conv3x3(s2,p1) + bias + ReLU + GroupNorm stage for
# one batch element.
#   ph_ref   : (1, 6, (Ho+1)*Wo, Cin) bf16  tap planes; plane a*3+kw holds
#              xp[b, (kh%2)+2i, kw+2j, :] flattened over (i, j)
#   w_ref    : (9, Cin, Cout) bf16          per-tap weights, tap = kh*3+kw
#   b_ref    : (1, Cout) f32                conv bias
#   g_ref    : (1, Cout) f32                GroupNorm gamma
#   beta_ref : (1, Cout) f32                GroupNorm beta
#   o_ref    : (1, HW, Cout) f32
# ----------------------------------------------------------------------------
def _stage_kernel(ph_ref, w_ref, b_ref, g_ref, beta_ref, o_ref, *,
                  Wo, HW, num_groups, cpg, inv_n, eps):
    Cout = o_ref.shape[-1]

    # ---- conv 3x3 stride 2 as 9 accumulating MXU matmuls (bf16 in, f32 acc) ----
    acc = jnp.zeros((HW, Cout), jnp.float32)
    for kh in range(3):
        a, dh = kh % 2, kh // 2
        for kw in range(3):
            # contiguous 2-D window of the tap plane: rows [dh*Wo, dh*Wo + HW)
            tap = ph_ref[0, a * 3 + kw, pl.ds(dh * Wo, HW), :]      # (HW, Cin) bf16
            acc = acc + jnp.dot(tap, w_ref[kh * 3 + kw],
                                preferred_element_type=jnp.float32)

    # ---- bias + ReLU (f32, VPU) ----
    y = jnp.maximum(acc + b_ref[...], 0.0)                          # (HW, Cout)

    # ---- GroupNorm statistics (f32; reductions on the XLU, y stays in VMEM) ----
    ch_sum = jnp.sum(y, axis=0, keepdims=True)                      # (1, Cout)
    ch_sq = jnp.sum(y * y, axis=0, keepdims=True)                   # (1, Cout)

    if cpg > 1:
        # reshape-reduce-broadcast over channels-per-group
        # (replaces the old Cout x Cout group-membership MXU matmul)
        def _group(v):
            g = jnp.sum(v.reshape(num_groups, cpg), axis=-1, keepdims=True)
            return jnp.broadcast_to(g, (num_groups, cpg)).reshape(1, num_groups * cpg)
        gsum, gsq = _group(ch_sum), _group(ch_sq)
    else:                                                           # cpg == 1: group == channel
        gsum, gsq = ch_sum, ch_sq

    mean = gsum * inv_n
    var = jnp.maximum(gsq * inv_n - mean * mean, 0.0)               # clamp: E[x^2]-m^2 can dip < 0
    inv = jax.lax.rsqrt(var + eps)                                  # EUP slot
    scale = inv * g_ref[...]
    shift = beta_ref[...] - mean * scale
    o_ref[0] = (y * scale + shift).astype(o_ref.dtype)


def _conv_gn_stage_pallas(planes, w_taps, bias, gamma, beta, Ho, Wo, num_groups):
    B, n_planes, RW, Cin = planes.shape
    Cout = w_taps.shape[-1]
    HW = Ho * Wo
    cpg = Cout // num_groups
    kernel = functools.partial(
        _stage_kernel, Wo=Wo, HW=HW, num_groups=num_groups, cpg=cpg,
        inv_n=1.0 / float(HW * cpg), eps=EPS)

    flops = 2 * B * HW * 9 * Cin * Cout + 10 * B * HW * Cout
    bytes_accessed = (B * n_planes * RW * Cin * 2      # bf16 tap planes
                      + 9 * Cin * Cout * 2             # bf16 weights
                      + 3 * Cout * 4                   # bias / gamma / beta
                      + B * HW * Cout * 4)             # f32 output

    vec_spec = pl.BlockSpec((1, Cout), lambda b: (0, 0))
    return pl.pallas_call(
        kernel,
        out_shape=jax.ShapeDtypeStruct((B, HW, Cout), jnp.float32),
        grid=(B,),
        in_specs=[
            pl.BlockSpec((1, n_planes, RW, Cin), lambda b: (b, 0, 0, 0)),
            pl.BlockSpec((9, Cin, Cout), lambda b: (0, 0, 0)),
            vec_spec, vec_spec, vec_spec,
        ],
        out_specs=pl.BlockSpec((1, HW, Cout), lambda b: (b, 0, 0)),
        compiler_params=pltpu.CompilerParams(
            dimension_semantics=("parallel",),
            vmem_limit_bytes=48 * 1024 * 1024),
        cost_estimate=pl.CostEstimate(
            flops=int(flops), transcendentals=int(B * Cout),
            bytes_accessed=int(bytes_accessed)),
    )(planes, w_taps, bias, gamma, beta)


# ----------------------------------------------------------------------------
# Wrapper-side layout plumbing: build the 6 tap planes (~1.5x input, bf16)
# ----------------------------------------------------------------------------
def _build_tap_planes(x_nhwc, Ho, Wo):
    """(B,H,W,C) -> (B, 6, (Ho+1)*Wo, C) bf16.

    Plane (a*3 + kw), flat row i*Wo + j  holds  xpad[b, a + 2i, kw + 2j, c],
    so the tap (kh, kw) of the stride-2 conv is the contiguous row range
    [ (kh//2)*Wo , (kh//2)*Wo + Ho*Wo )  of plane ((kh%2)*3 + kw).
    """
    B, H, W, C = x_nhwc.shape
    xp = jnp.pad(x_nhwc, ((0, 0), (1, 1), (1, 1), (0, 0)))
    R = Ho + 1
    planes = []
    for a in (0, 1):                                    # row parity
        xa = xp[:, a::2, :, :]
        xa = jnp.pad(xa, ((0, 0), (0, R - xa.shape[1]), (0, 0), (0, 0)))
        for kw in range(3):                             # column offset class
            p = xa[:, :, kw::2, :][:, :, :Wo, :]        # (B, R, Wo, C)
            planes.append(p.reshape(B, R * Wo, C))
    return jnp.stack(planes, axis=1).astype(jnp.bfloat16)


def _run_stage(x_nhwc, params, num_groups=32):
    """One down-block: conv3x3 s2 p1 + ReLU + GroupNorm(32, Cout). NHWC in/out."""
    w, b, gamma, beta = params["w"], params["b"], params["gamma"], params["beta"]
    Cout, Cin = w.shape[0], w.shape[1]
    B, H, W, _ = x_nhwc.shape
    Ho = (H - 1) // 2 + 1
    Wo = (W - 1) // 2 + 1
    planes = _build_tap_planes(x_nhwc, Ho, Wo)          # (B, 6, (Ho+1)*Wo, Cin) bf16
    # (Cout, Cin, 3, 3) -> (9, Cin, Cout); tap index = kh*3 + kw
    w_taps = jnp.transpose(w, (2, 3, 1, 0)).reshape(9, Cin, Cout).astype(jnp.bfloat16)
    y = _conv_gn_stage_pallas(planes, w_taps,
                              b.reshape(1, Cout).astype(jnp.float32),
                              gamma.reshape(1, Cout).astype(jnp.float32),
                              beta.reshape(1, Cout).astype(jnp.float32),
                              Ho, Wo, num_groups)
    return y.reshape(B, Ho, Wo, Cout)


def multi_scale_downsampling(x_nchw, params):
    """Matches MultiScaleDownsamplingModule.forward. NCHW in, dict of NCHW out."""
    x = jnp.transpose(x_nchw, (0, 2, 3, 1))             # -> NHWC for the kernels
    outputs = {}
    x = _run_stage(x, params["down1"])
    outputs["res2"] = x
    outputs["res3"] = x
    x = _run_stage(x, params["down2"])
    outputs["res4"] = x
    x = _run_stage(x, params["down3"])
    outputs["res5"] = x
    # down4 is computed but discarded by the PyTorch forward -> dead compute, skipped.
    return {k: jnp.transpose(v, (0, 3, 1, 2)) for k, v in outputs.items()}


# ----------------------------------------------------------------------------
# Deterministic parameter init (synthetic, matches module's shapes)
# ----------------------------------------------------------------------------
def init_params(key, in_channels, out_channels):
    params = {}
    cin = in_channels
    for i in range(1, 5):
        key, kw, kb = jax.random.split(key, 3)
        params[f"down{i}"] = dict(
            w=0.05 * jax.random.normal(kw, (out_channels, cin, 3, 3), jnp.float32),
            b=0.01 * jax.random.normal(kb, (out_channels,), jnp.float32),
            gamma=jnp.ones((out_channels,), jnp.float32),
            beta=jnp.zeros((out_channels,), jnp.float32),
        )
        cin = out_channels
    return params


# ----------------------------------------------------------------------------
# Pure-JAX references for correctness check.
#   match_bf16=True mirrors the kernel's bf16 operand cast (tight tolerance);
#   match_bf16=False is the exact f32 module semantics (looser tolerance, the
#   difference is just bf16 conv-operand rounding across the 3 stages).
# ----------------------------------------------------------------------------
def _ref_stage(x_nhwc, params, num_groups=32, match_bf16=False):
    w, b, gamma, beta = params["w"], params["b"], params["gamma"], params["beta"]
    if match_bf16:
        x_c = x_nhwc.astype(jnp.bfloat16).astype(jnp.float32)
        w_c = w.astype(jnp.bfloat16).astype(jnp.float32)
    else:
        x_c, w_c = x_nhwc, w
    w_hwio = jnp.transpose(w_c, (2, 3, 1, 0))
    y = jax.lax.conv_general_dilated(
        x_c, w_hwio, window_strides=(2, 2), padding=((1, 1), (1, 1)),
        dimension_numbers=("NHWC", "HWIO", "NHWC"))
    y = y + b.reshape(1, 1, 1, -1)
    y = jnp.maximum(y, 0.0)
    B, H, W, C = y.shape
    cpg = C // num_groups
    yg = y.reshape(B, H, W, num_groups, cpg)
    mean = jnp.mean(yg, axis=(1, 2, 4), keepdims=True)
    var = jnp.mean((yg - mean) ** 2, axis=(1, 2, 4), keepdims=True)
    yn = ((yg - mean) * jax.lax.rsqrt(var + EPS)).reshape(B, H, W, C)
    return yn * gamma.reshape(1, 1, 1, -1) + beta.reshape(1, 1, 1, -1)


def _ref_forward(x_nchw, params, match_bf16=False):
    x = jnp.transpose(x_nchw, (0, 2, 3, 1))
    outs = {}
    x = _ref_stage(x, params["down1"], match_bf16=match_bf16)
    outs["res2"] = x
    outs["res3"] = x
    x = _ref_stage(x, params["down2"], match_bf16=match_bf16)
    outs["res4"] = x
    x = _ref_stage(x, params["down3"], match_bf16=match_bf16)
    outs["res5"] = x
    return {k: jnp.transpose(v, (0, 3, 1, 2)) for k, v in outs.items()}


if __name__ == "__main__":
    key = jax.random.PRNGKey(0)
    key, kx = jax.random.split(key)

    B, Cin, Cout, H, W = 2, 4, 32, 16, 16   # GroupNorm(32, Cout) requires 32 | Cout
    x = jax.random.normal(kx, (B, Cin, H, W), jnp.float32)   # NCHW, like PyTorch
    params = init_params(key, Cin, Cout)

    fwd = jax.jit(multi_scale_downsampling)
    outs = fwd(x, params)
    jax.block_until_ready(outs)

    ref_match = _ref_forward(x, params, match_bf16=True)    # same bf16 operand numerics
    ref_exact = _ref_forward(x, params, match_bf16=False)   # exact f32 module semantics
    for k in ("res2", "res3", "res4", "res5"):
        assert outs[k].shape == ref_exact[k].shape, (k, outs[k].shape, ref_exact[k].shape)
        err_m = float(jnp.max(jnp.abs(outs[k] - ref_match[k])))
        err_e = float(jnp.max(jnp.abs(outs[k] - ref_exact[k])))
        assert err_m < 2e-2, f"{k} mismatch vs bf16-matched ref: {err_m}"
        assert err_e < 1.5e-1, f"{k} mismatch vs f32 ref: {err_e}"

    print("KERNEL_OK")
</pallas_src>

<mosaic_0001>
module attributes {stable_mosaic.version = 11 : i64} {
  func.func @_stage_kernel(%arg0: i32, %arg1: memref<1x6x72x4xbf16, #tpu.memory_space<vmem>>, %arg2: memref<9x4x32xbf16, #tpu.memory_space<vmem>>, %arg3: memref<1x32xf32, #tpu.memory_space<vmem>>, %arg4: memref<1x32xf32, #tpu.memory_space<vmem>>, %arg5: memref<1x32xf32, #tpu.memory_space<vmem>>, %arg6: memref<1x64x32xf32, #tpu.memory_space<vmem>>) attributes {dimension_semantics = [#tpu.dimension_semantics<parallel>], iteration_bounds = array<i64: 2>, scalar_prefetch = 0 : i64, scratch_operands = 0 : i64, tpu.core_type = #tpu.core_type<tc>, window_params = [{transform_indices = @transform_0, window_bounds = array<i64: 1, 6, 72, 4>}, {pipeline_mode = #tpu.pipeline_mode<synchronous>, transform_indices = @transform_1, window_bounds = array<i64: 9, 4, 32>}, {pipeline_mode = #tpu.pipeline_mode<synchronous>, transform_indices = @transform_2, window_bounds = array<i64: 1, 32>}, {pipeline_mode = #tpu.pipeline_mode<synchronous>, transform_indices = @transform_3, window_bounds = array<i64: 1, 32>}, {pipeline_mode = #tpu.pipeline_mode<synchronous>, transform_indices = @transform_4, window_bounds = array<i64: 1, 32>}, {transform_indices = @transform_5, window_bounds = array<i64: 1, 64, 32>}]} {
    %cst = arith.constant 0.000000e+00 : f32
    %0 = vector.broadcast %cst : f32 to vector<64x32xf32>
    %c0 = arith.constant 0 : index
    %c0_0 = arith.constant 0 : index
    %c0_1 = arith.constant 0 : index
    %c0_2 = arith.constant 0 : index
    %1 = vector.load %arg1[%c0, %c0_0, %c0_1, %c0_2] : memref<1x6x72x4xbf16, #tpu.memory_space<vmem>>, vector<1x1x64x4xbf16>
    %2 = vector.shape_cast %1 : vector<1x1x64x4xbf16> to vector<64x4xbf16>
    %c0_3 = arith.constant 0 : index
    %c0_4 = arith.constant 0 : index
    %c0_5 = arith.constant 0 : index
    %3 = vector.load %arg2[%c0_3, %c0_4, %c0_5] : memref<9x4x32xbf16, #tpu.memory_space<vmem>>, vector<1x4x32xbf16>
    %4 = vector.shape_cast %3 : vector<1x4x32xbf16> to vector<4x32xbf16>
    %cst_6 = arith.constant dense<0.000000e+00> : vector<64x32xf32>
    %5 = tpu.matmul %2, %4, %cst_6 {dimension_numbers = #tpu.dot_dimension_numbers<[1], [0], [0], [1], [0, 0, 1, 1], [], []>} : vector<64x4xbf16>, vector<4x32xbf16>, vector<64x32xf32> -> vector<64x32xf32>
    %6 = arith.addf %0, %5 : vector<64x32xf32>
    %c0_7 = arith.constant 0 : index
    %c1 = arith.constant 1 : index
    %c0_8 = arith.constant 0 : index
    %c0_9 = arith.constant 0 : index
    %7 = vector.load %arg1[%c0_7, %c1, %c0_8, %c0_9] : memref<1x6x72x4xbf16, #tpu.memory_space<vmem>>, vector<1x1x64x4xbf16>
    %8 = vector.shape_cast %7 : vector<1x1x64x4xbf16> to vector<64x4xbf16>
    %c1_10 = arith.constant 1 : index
    %c0_11 = arith.constant 0 : index
    %c0_12 = arith.constant 0 : index
    %9 = vector.load %arg2[%c1_10, %c0_11, %c0_12] : memref<9x4x32xbf16, #tpu.memory_space<vmem>>, vector<1x4x32xbf16>
    %10 = vector.shape_cast %9 : vector<1x4x32xbf16> to vector<4x32xbf16>
    %cst_13 = arith.constant dense<0.000000e+00> : vector<64x32xf32>
    %11 = tpu.matmul %8, %10, %cst_13 {dimension_numbers = #tpu.dot_dimension_numbers<[1], [0], [0], [1], [0, 0, 1, 1], [], []>} : vector<64x4xbf16>, vector<4x32xbf16>, vector<64x32xf32> -> vector<64x32xf32>
    %12 = arith.addf %6, %11 : vector<64x32xf32>
    %c0_14 = arith.constant 0 : index
    %c2 = arith.constant 2 : index
    %c0_15 = arith.constant 0 : index
    %c0_16 = arith.constant 0 : index
    %13 = vector.load %arg1[%c0_14, %c2, %c0_15, %c0_16] : memref<1x6x72x4xbf16, #tpu.memory_space<vmem>>, vector<1x1x64x4xbf16>
    %14 = vector.shape_cast %13 : vector<1x1x64x4xbf16> to vector<64x4xbf16>
    %c2_17 = arith.constant 2 : index
    %c0_18 = arith.constant 0 : index
    %c0_19 = arith.constant 0 : index
    %15 = vector.load %arg2[%c2_17, %c0_18, %c0_19] : memref<9x4x32xbf16, #tpu.memory_space<vmem>>, vector<1x4x32xbf16>
    %16 = vector.shape_cast %15 : vector<1x4x32xbf16> to vector<4x32xbf16>
    %cst_20 = arith.constant dense<0.000000e+00> : vector<64x32xf32>
    %17 = tpu.matmul %14, %16, %cst_20 {dimension_numbers = #tpu.dot_dimension_numbers<[1], [0], [0], [1], [0, 0, 1, 1], [], []>} : vector<64x4xbf16>, vector<4x32xbf16>, vector<64x32xf32> -> vector<64x32xf32>
    %18 = arith.addf %12, %17 : vector<64x32xf32>
    %c0_21 = arith.constant 0 : index
    %c3 = arith.constant 3 : index
    %c0_22 = arith.constant 0 : index
    %c0_23 = arith.constant 0 : index
    %19 = vector.load %arg1[%c0_21, %c3, %c0_22, %c0_23] : memref<1x6x72x4xbf16, #tpu.memory_space<vmem>>, vector<1x1x64x4xbf16>
    %20 = vector.shape_cast %19 : vector<1x1x64x4xbf16> to vector<64x4xbf16>
    %c3_24 = arith.constant 3 : index
    %c0_25 = arith.constant 0 : index
    %c0_26 = arith.constant 0 : index
    %21 = vector.load %arg2[%c3_24, %c0_25, %c0_26] : memref<9x4x32xbf16, #tpu.memory_space<vmem>>, vector<1x4x32xbf16>
    %22 = vector.shape_cast %21 : vector<1x4x32xbf16> to vector<4x32xbf16>
    %cst_27 = arith.constant dense<0.000000e+00> : vector<64x32xf32>
    %23 = tpu.matmul %20, %22, %cst_27 {dimension_numbers = #tpu.dot_dimension_numbers<[1], [0], [0], [1], [0, 0, 1, 1], [], []>} : vector<64x4xbf16>, vector<4x32xbf16>, vector<64x32xf32> -> vector<64x32xf32>
    %24 = arith.addf %18, %23 : vector<64x32xf32>
    %c0_28 = arith.constant 0 : index
    %c4 = arith.constant 4 : index
    %c0_29 = arith.constant 0 : index
    %c0_30 = arith.constant 0 : index
    %25 = vector.load %arg1[%c0_28, %c4, %c0_29, %c0_30] : memref<1x6x72x4xbf16, #tpu.memory_space<vmem>>, vector<1x1x64x4xbf16>
    %26 = vector.shape_cast %25 : vector<1x1x64x4xbf16> to vector<64x4xbf16>
    %c4_31 = arith.constant 4 : index
    %c0_32 = arith.constant 0 : index
    %c0_33 = arith.constant 0 : index
    %27 = vector.load %arg2[%c4_31, %c0_32, %c0_33] : memref<9x4x32xbf16, #tpu.memory_space<vmem>>, vector<1x4x32xbf16>
    %28 = vector.shape_cast %27 : vector<1x4x32xbf16> to vector<4x32xbf16>
    %cst_34 = arith.constant dense<0.000000e+00> : vector<64x32xf32>
    %29 = tpu.matmul %26, %28, %cst_34 {dimension_numbers = #tpu.dot_dimension_numbers<[1], [0], [0], [1], [0, 0, 1, 1], [], []>} : vector<64x4xbf16>, vector<4x32xbf16>, vector<64x32xf32> -> vector<64x32xf32>
    %30 = arith.addf %24, %29 : vector<64x32xf32>
    %c0_35 = arith.constant 0 : index
    %c5 = arith.constant 5 : index
    %c0_36 = arith.constant 0 : index
    %c0_37 = arith.constant 0 : index
    %31 = vector.load %arg1[%c0_35, %c5, %c0_36, %c0_37] : memref<1x6x72x4xbf16, #tpu.memory_space<vmem>>, vector<1x1x64x4xbf16>
    %32 = vector.shape_cast %31 : vector<1x1x64x4xbf16> to vector<64x4xbf16>
    %c5_38 = arith.constant 5 : index
    %c0_39 = arith.constant 0 : index
    %c0_40 = arith.constant 0 : index
    %33 = vector.load %arg2[%c5_38, %c0_39, %c0_40] : memref<9x4x32xbf16, #tpu.memory_space<vmem>>, vector<1x4x32xbf16>
    %34 = vector.shape_cast %33 : vector<1x4x32xbf16> to vector<4x32xbf16>
    %cst_41 = arith.constant dense<0.000000e+00> : vector<64x32xf32>
    %35 = tpu.matmul %32, %34, %cst_41 {dimension_numbers = #tpu.dot_dimension_numbers<[1], [0], [0], [1], [0, 0, 1, 1], [], []>} : vector<64x4xbf16>, vector<4x32xbf16>, vector<64x32xf32> -> vector<64x32xf32>
    %36 = arith.addf %30, %35 : vector<64x32xf32>
    %c0_42 = arith.constant 0 : index
    %c0_43 = arith.constant 0 : index
    %c8 = arith.constant 8 : index
    %c0_44 = arith.constant 0 : index
    %37 = vector.load %arg1[%c0_42, %c0_43, %c8, %c0_44] : memref<1x6x72x4xbf16, #tpu.memory_space<vmem>>, vector<1x1x64x4xbf16>
    %38 = vector.shape_cast %37 : vector<1x1x64x4xbf16> to vector<64x4xbf16>
    %c6 = arith.constant 6 : index
    %c0_45 = arith.constant 0 : index
    %c0_46 = arith.constant 0 : index
    %39 = vector.load %arg2[%c6, %c0_45, %c0_46] : memref<9x4x32xbf16, #tpu.memory_space<vmem>>, vector<1x4x32xbf16>
    %40 = vector.shape_cast %39 : vector<1x4x32xbf16> to vector<4x32xbf16>
    %cst_47 = arith.constant dense<0.000000e+00> : vector<64x32xf32>
    %41 = tpu.matmul %38, %40, %cst_47 {dimension_numbers = #tpu.dot_dimension_numbers<[1], [0], [0], [1], [0, 0, 1, 1], [], []>} : vector<64x4xbf16>, vector<4x32xbf16>, vector<64x32xf32> -> vector<64x32xf32>
    %42 = arith.addf %36, %41 : vector<64x32xf32>
    %c0_48 = arith.constant 0 : index
    %c1_49 = arith.constant 1 : index
    %c8_50 = arith.constant 8 : index
    %c0_51 = arith.constant 0 : index
    %43 = vector.load %arg1[%c0_48, %c1_49, %c8_50, %c0_51] : memref<1x6x72x4xbf16, #tpu.memory_space<vmem>>, vector<1x1x64x4xbf16>
    %44 = vector.shape_cast %43 : vector<1x1x64x4xbf16> to vector<64x4xbf16>
    %c7 = arith.constant 7 : index
    %c0_52 = arith.constant 0 : index
    %c0_53 = arith.constant 0 : index
    %45 = vector.load %arg2[%c7, %c0_52, %c0_53] : memref<9x4x32xbf16, #tpu.memory_space<vmem>>, vector<1x4x32xbf16>
    %46 = vector.shape_cast %45 : vector<1x4x32xbf16> to vector<4x32xbf16>
    %cst_54 = arith.constant dense<0.000000e+00> : vector<64x32xf32>
    %47 = tpu.matmul %44, %46, %cst_54 {dimension_numbers = #tpu.dot_dimension_numbers<[1], [0], [0], [1], [0, 0, 1, 1], [], []>} : vector<64x4xbf16>, vector<4x32xbf16>, vector<64x32xf32> -> vector<64x32xf32>
    %48 = arith.addf %42, %47 : vector<64x32xf32>
    %c0_55 = arith.constant 0 : index
    %c2_56 = arith.constant 2 : index
    %c8_57 = arith.constant 8 : index
    %c0_58 = arith.constant 0 : index
    %49 = vector.load %arg1[%c0_55, %c2_56, %c8_57, %c0_58] : memref<1x6x72x4xbf16, #tpu.memory_space<vmem>>, vector<1x1x64x4xbf16>
    %50 = vector.shape_cast %49 : vector<1x1x64x4xbf16> to vector<64x4xbf16>
    %c8_59 = arith.constant 8 : index
    %c0_60 = arith.constant 0 : index
    %c0_61 = arith.constant 0 : index
    %51 = vector.load %arg2[%c8_59, %c0_60, %c0_61] : memref<9x4x32xbf16, #tpu.memory_space<vmem>>, vector<1x4x32xbf16>
    %52 = vector.shape_cast %51 : vector<1x4x32xbf16> to vector<4x32xbf16>
    %cst_62 = arith.constant dense<0.000000e+00> : vector<64x32xf32>
    %53 = tpu.matmul %50, %52, %cst_62 {dimension_numbers = #tpu.dot_dimension_numbers<[1], [0], [0], [1], [0, 0, 1, 1], [], []>} : vector<64x4xbf16>, vector<4x32xbf16>, vector<64x32xf32> -> vector<64x32xf32>
    %54 = arith.addf %48, %53 : vector<64x32xf32>
    %c0_63 = arith.constant 0 : index
    %c0_64 = arith.constant 0 : index
    %55 = vector.load %arg3[%c0_63, %c0_64] : memref<1x32xf32, #tpu.memory_space<vmem>>, vector<1x32xf32>
    %56 = vector.broadcast %55 : vector<1x32xf32> to vector<64x32xf32>
    %57 = arith.addf %54, %56 : vector<64x32xf32>
    %cst_65 = arith.constant 0.000000e+00 : f32
    %58 = vector.broadcast %cst_65 : f32 to vector<64x32xf32>
    %59 = arith.maximumf %57, %58 : vector<64x32xf32>
    %cst_66 = arith.constant dense<0.000000e+00> : vector<32xf32>
    %60 = vector.multi_reduction <add>, %59, %cst_66 [0] : vector<64x32xf32> to vector<32xf32>
    %61 = vector.shape_cast %60 : vector<32xf32> to vector<1x32xf32>
    %62 = arith.mulf %59, %59 : vector<64x32xf32>
    %cst_67 = arith.constant dense<0.000000e+00> : vector<32xf32>
    %63 = vector.multi_reduction <add>, %62, %cst_67 [0] : vector<64x32xf32> to vector<32xf32>
    %64 = vector.shape_cast %63 : vector<32xf32> to vector<1x32xf32>
    %cst_68 = arith.constant 1.562500e-02 : f32
    %65 = vector.broadcast %cst_68 : f32 to vector<1x32xf32>
    %66 = arith.mulf %61, %65 : vector<1x32xf32>
    %cst_69 = arith.constant 1.562500e-02 : f32
    %67 = vector.broadcast %cst_69 : f32 to vector<1x32xf32>
    %68 = arith.mulf %64, %67 : vector<1x32xf32>
    %69 = arith.mulf %66, %66 : vector<1x32xf32>
    %70 = arith.subf %68, %69 : vector<1x32xf32>
    %cst_70 = arith.constant 0.000000e+00 : f32
    %71 = vector.broadcast %cst_70 : f32 to vector<1x32xf32>
    %72 = arith.maximumf %70, %71 : vector<1x32xf32>
    %cst_71 = arith.constant 9.99999974E-6 : f32
    %73 = vector.broadcast %cst_71 : f32 to vector<1x32xf32>
    %74 = arith.addf %72, %73 : vector<1x32xf32>
    %75 = math.rsqrt %74 : vector<1x32xf32>
    %c0_72 = arith.constant 0 : index
    %c0_73 = arith.constant 0 : index
    %76 = vector.load %arg4[%c0_72, %c0_73] : memref<1x32xf32, #tpu.memory_space<vmem>>, vector<1x32xf32>
    %77 = arith.mulf %75, %76 : vector<1x32xf32>
    %c0_74 = arith.constant 0 : index
    %c0_75 = arith.constant 0 : index
    %78 = vector.load %arg5[%c0_74, %c0_75] : memref<1x32xf32, #tpu.memory_space<vmem>>, vector<1x32xf32>
    %79 = arith.mulf %66, %77 : vector<1x32xf32>
    %80 = arith.subf %78, %79 : vector<1x32xf32>
    %81 = vector.broadcast %77 : vector<1x32xf32> to vector<64x32xf32>
    %82 = arith.mulf %59, %81 : vector<64x32xf32>
    %83 = vector.broadcast %80 : vector<1x32xf32> to vector<64x32xf32>
    %84 = arith.addf %82, %83 : vector<64x32xf32>
    %c0_76 = arith.constant 0 : index
    %c0_77 = arith.constant 0 : index
    %c0_78 = arith.constant 0 : index
    %85 = vector.load %arg6[%c0_76, %c0_77, %c0_78] : memref<1x64x32xf32, #tpu.memory_space<vmem>>, vector<1x64x32xf32>
    %86 = vector.shape_cast %85 : vector<1x64x32xf32> to vector<64x32xf32>
    %87 = vector.shape_cast %84 : vector<64x32xf32> to vector<1x64x32xf32>
    tpu.vector_store %arg6[%c0_76, %c0_77, %c0_78], %87 {strides = array<i32>} : memref<1x64x32xf32, #tpu.memory_space<vmem>>, vector<1x64x32xf32>,
    return
  }
  func.func @transform_0(%arg0: i32) -> (i32, i32, i32, i32) {
    %c0_i32 = arith.constant 0 : i32
    %c0_i32_0 = arith.constant 0 : i32
    %c0_i32_1 = arith.constant 0 : i32
    %c0_i32_2 = arith.constant 0 : i32
    return %arg0, %c0_i32, %c0_i32_0, %c0_i32_1 : i32, i32, i32, i32
  }
  func.func @transform_1(%arg0: i32) -> (i32, i32, i32) {
    %c0_i32 = arith.constant 0 : i32
    %c0_i32_0 = arith.constant 0 : i32
    %c0_i32_1 = arith.constant 0 : i32
    %c0_i32_2 = arith.constant 0 : i32
    return %c0_i32, %c0_i32_0, %c0_i32_1 : i32, i32, i32
  }
  func.func @transform_2(%arg0: i32) -> (i32, i32) {
    %c0_i32 = arith.constant 0 : i32
    %c0_i32_0 = arith.constant 0 : i32
    %c0_i32_1 = arith.constant 0 : i32
    return %c0_i32, %c0_i32_0 : i32, i32
  }
  func.func @transform_3(%arg0: i32) -> (i32, i32) {
    %c0_i32 = arith.constant 0 : i32
    %c0_i32_0 = arith.constant 0 : i32
    %c0_i32_1 = arith.constant 0 : i32
    return %c0_i32, %c0_i32_0 : i32, i32
  }
  func.func @transform_4(%arg0: i32) -> (i32, i32) {
    %c0_i32 = arith.constant 0 : i32
    %c0_i32_0 = arith.constant 0 : i32
    %c0_i32_1 = arith.constant 0 : i32
    return %c0_i32, %c0_i32_0 : i32, i32
  }
  func.func @transform_5(%arg0: i32) -> (i32, i32, i32) {
    %c0_i32 = arith.constant 0 : i32
    %c0_i32_0 = arith.constant 0 : i32
    %c0_i32_1 = arith.constant 0 : i32
    return %arg0, %c0_i32, %c0_i32_0 : i32, i32, i32
  }
}

module attributes {stable_mosaic.version = 11 : i64} {
  func.func @_stage_kernel(%arg0: i32, %arg1: memref<1x6x20x32xbf16, #tpu.memory_space<vmem>>, %arg2: memref<9x32x32xbf16, #tpu.memory_space<vmem>>, %arg3: memref<1x32xf32, #tpu.memory_space<vmem>>, %arg4: memref<1x32xf32, #tpu.memory_space<vmem>>, %arg5: memref<1x32xf32, #tpu.memory_space<vmem>>, %arg6: memref<1x16x32xf32, #tpu.memory_space<vmem>>) attributes {dimension_semantics = [#tpu.dimension_semantics<parallel>], iteration_bounds = array<i64: 2>, scalar_prefetch = 0 : i64, scratch_operands = 0 : i64, tpu.core_type = #tpu.core_type<tc>, window_params = [{transform_indices = @transform_0, window_bounds = array<i64: 1, 6, 20, 32>}, {pipeline_mode = #tpu.pipeline_mode<synchronous>, transform_indices = @transform_1, window_bounds = array<i64: 9, 32, 32>}, {pipeline_mode = #tpu.pipeline_mode<synchronous>, transform_indices = @transform_2, window_bounds = array<i64: 1, 32>}, {pipeline_mode = #tpu.pipeline_mode<synchronous>, transform_indices = @transform_3, window_bounds = array<i64: 1, 32>}, {pipeline_mode = #tpu.pipeline_mode<synchronous>, transform_indices = @transform_4, window_bounds = array<i64: 1, 32>}, {transform_indices = @transform_5, window_bounds = array<i64: 1, 16, 32>}]} {
    %cst = arith.constant 0.000000e+00 : f32
    %0 = vector.broadcast %cst : f32 to vector<16x32xf32>
    %c0 = arith.constant 0 : index
    %c0_0 = arith.constant 0 : index
    %c0_1 = arith.constant 0 : index
    %c0_2 = arith.constant 0 : index
    %1 = vector.load %arg1[%c0, %c0_0, %c0_1, %c0_2] : memref<1x6x20x32xbf16, #tpu.memory_space<vmem>>, vector<1x1x16x32xbf16>
    %2 = vector.shape_cast %1 : vector<1x1x16x32xbf16> to vector<16x32xbf16>
    %c0_3 = arith.constant 0 : index
    %c0_4 = arith.constant 0 : index
    %c0_5 = arith.constant 0 : index
    %3 = vector.load %arg2[%c0_3, %c0_4, %c0_5] : memref<9x32x32xbf16, #tpu.memory_space<vmem>>, vector<1x32x32xbf16>
    %4 = vector.shape_cast %3 : vector<1x32x32xbf16> to vector<32x32xbf16>
    %cst_6 = arith.constant dense<0.000000e+00> : vector<16x32xf32>
    %5 = tpu.matmul %2, %4, %cst_6 {dimension_numbers = #tpu.dot_dimension_numbers<[1], [0], [0], [1], [0, 0, 1, 1], [], []>} : vector<16x32xbf16>, vector<32x32xbf16>, vector<16x32xf32> -> vector<16x32xf32>
    %6 = arith.addf %0, %5 : vector<16x32xf32>
    %c0_7 = arith.constant 0 : index
    %c1 = arith.constant 1 : index
    %c0_8 = arith.constant 0 : index
    %c0_9 = arith.constant 0 : index
    %7 = vector.load %arg1[%c0_7, %c1, %c0_8, %c0_9] : memref<1x6x20x32xbf16, #tpu.memory_space<vmem>>, vector<1x1x16x32xbf16>
    %8 = vector.shape_cast %7 : vector<1x1x16x32xbf16> to vector<16x32xbf16>
    %c1_10 = arith.constant 1 : index
    %c0_11 = arith.constant 0 : index
    %c0_12 = arith.constant 0 : index
    %9 = vector.load %arg2[%c1_10, %c0_11, %c0_12] : memref<9x32x32xbf16, #tpu.memory_space<vmem>>, vector<1x32x32xbf16>
    %10 = vector.shape_cast %9 : vector<1x32x32xbf16> to vector<32x32xbf16>
    %cst_13 = arith.constant dense<0.000000e+00> : vector<16x32xf32>
    %11 = tpu.matmul %8, %10, %cst_13 {dimension_numbers = #tpu.dot_dimension_numbers<[1], [0], [0], [1], [0, 0, 1, 1], [], []>} : vector<16x32xbf16>, vector<32x32xbf16>, vector<16x32xf32> -> vector<16x32xf32>
    %12 = arith.addf %6, %11 : vector<16x32xf32>
    %c0_14 = arith.constant 0 : index
    %c2 = arith.constant 2 : index
    %c0_15 = arith.constant 0 : index
    %c0_16 = arith.constant 0 : index
    %13 = vector.load %arg1[%c0_14, %c2, %c0_15, %c0_16] : memref<1x6x20x32xbf16, #tpu.memory_space<vmem>>, vector<1x1x16x32xbf16>
    %14 = vector.shape_cast %13 : vector<1x1x16x32xbf16> to vector<16x32xbf16>
    %c2_17 = arith.constant 2 : index
    %c0_18 = arith.constant 0 : index
    %c0_19 = arith.constant 0 : index
    %15 = vector.load %arg2[%c2_17, %c0_18, %c0_19] : memref<9x32x32xbf16, #tpu.memory_space<vmem>>, vector<1x32x32xbf16>
    %16 = vector.shape_cast %15 : vector<1x32x32xbf16> to vector<32x32xbf16>
    %cst_20 = arith.constant dense<0.000000e+00> : vector<16x32xf32>
    %17 = tpu.matmul %14, %16, %cst_20 {dimension_numbers = #tpu.dot_dimension_numbers<[1], [0], [0], [1], [0, 0, 1, 1], [], []>} : vector<16x32xbf16>, vector<32x32xbf16>, vector<16x32xf32> -> vector<16x32xf32>
    %18 = arith.addf %12, %17 : vector<16x32xf32>
    %c0_21 = arith.constant 0 : index
    %c3 = arith.constant 3 : index
    %c0_22 = arith.constant 0 : index
    %c0_23 = arith.constant 0 : index
    %19 = vector.load %arg1[%c0_21, %c3, %c0_22, %c0_23] : memref<1x6x20x32xbf16, #tpu.memory_space<vmem>>, vector<1x1x16x32xbf16>
    %20 = vector.shape_cast %19 : vector<1x1x16x32xbf16> to vector<16x32xbf16>
    %c3_24 = arith.constant 3 : index
    %c0_25 = arith.constant 0 : index
    %c0_26 = arith.constant 0 : index
    %21 = vector.load %arg2[%c3_24, %c0_25, %c0_26] : memref<9x32x32xbf16, #tpu.memory_space<vmem>>, vector<1x32x32xbf16>
    %22 = vector.shape_cast %21 : vector<1x32x32xbf16> to vector<32x32xbf16>
    %cst_27 = arith.constant dense<0.000000e+00> : vector<16x32xf32>
    %23 = tpu.matmul %20, %22, %cst_27 {dimension_numbers = #tpu.dot_dimension_numbers<[1], [0], [0], [1], [0, 0, 1, 1], [], []>} : vector<16x32xbf16>, vector<32x32xbf16>, vector<16x32xf32> -> vector<16x32xf32>
    %24 = arith.addf %18, %23 : vector<16x32xf32>
    %c0_28 = arith.constant 0 : index
    %c4 = arith.constant 4 : index
    %c0_29 = arith.constant 0 : index
    %c0_30 = arith.constant 0 : index
    %25 = vector.load %arg1[%c0_28, %c4, %c0_29, %c0_30] : memref<1x6x20x32xbf16, #tpu.memory_space<vmem>>, vector<1x1x16x32xbf16>
    %26 = vector.shape_cast %25 : vector<1x1x16x32xbf16> to vector<16x32xbf16>
    %c4_31 = arith.constant 4 : index
    %c0_32 = arith.constant 0 : index
    %c0_33 = arith.constant 0 : index
    %27 = vector.load %arg2[%c4_31, %c0_32, %c0_33] : memref<9x32x32xbf16, #tpu.memory_space<vmem>>, vector<1x32x32xbf16>
    %28 = vector.shape_cast %27 : vector<1x32x32xbf16> to vector<32x32xbf16>
    %cst_34 = arith.constant dense<0.000000e+00> : vector<16x32xf32>
    %29 = tpu.matmul %26, %28, %cst_34 {dimension_numbers = #tpu.dot_dimension_numbers<[1], [0], [0], [1], [0, 0, 1, 1], [], []>} : vector<16x32xbf16>, vector<32x32xbf16>, vector<16x32xf32> -> vector<16x32xf32>
    %30 = arith.addf %24, %29 : vector<16x32xf32>
    %c0_35 = arith.constant 0 : index
    %c5 = arith.constant 5 : index
    %c0_36 = arith.constant 0 : index
    %c0_37 = arith.constant 0 : index
    %31 = vector.load %arg1[%c0_35, %c5, %c0_36, %c0_37] : memref<1x6x20x32xbf16, #tpu.memory_space<vmem>>, vector<1x1x16x32xbf16>
    %32 = vector.shape_cast %31 : vector<1x1x16x32xbf16> to vector<16x32xbf16>
    %c5_38 = arith.constant 5 : index
    %c0_39 = arith.constant 0 : index
    %c0_40 = arith.constant 0 : index
    %33 = vector.load %arg2[%c5_38, %c0_39, %c0_40] : memref<9x32x32xbf16, #tpu.memory_space<vmem>>, vector<1x32x32xbf16>
    %34 = vector.shape_cast %33 : vector<1x32x32xbf16> to vector<32x32xbf16>
    %cst_41 = arith.constant dense<0.000000e+00> : vector<16x32xf32>
    %35 = tpu.matmul %32, %34, %cst_41 {dimension_numbers = #tpu.dot_dimension_numbers<[1], [0], [0], [1], [0, 0, 1, 1], [], []>} : vector<16x32xbf16>, vector<32x32xbf16>, vector<16x32xf32> -> vector<16x32xf32>
    %36 = arith.addf %30, %35 : vector<16x32xf32>
    %c0_42 = arith.constant 0 : index
    %c0_43 = arith.constant 0 : index
    %c4_44 = arith.constant 4 : index
    %c0_45 = arith.constant 0 : index
    %37 = vector.load %arg1[%c0_42, %c0_43, %c4_44, %c0_45] : memref<1x6x20x32xbf16, #tpu.memory_space<vmem>>, vector<1x1x16x32xbf16>
    %38 = vector.shape_cast %37 : vector<1x1x16x32xbf16> to vector<16x32xbf16>
    %c6 = arith.constant 6 : index
    %c0_46 = arith.constant 0 : index
    %c0_47 = arith.constant 0 : index
    %39 = vector.load %arg2[%c6, %c0_46, %c0_47] : memref<9x32x32xbf16, #tpu.memory_space<vmem>>, vector<1x32x32xbf16>
    %40 = vector.shape_cast %39 : vector<1x32x32xbf16> to vector<32x32xbf16>
    %cst_48 = arith.constant dense<0.000000e+00> : vector<16x32xf32>
    %41 = tpu.matmul %38, %40, %cst_48 {dimension_numbers = #tpu.dot_dimension_numbers<[1], [0], [0], [1], [0, 0, 1, 1], [], []>} : vector<16x32xbf16>, vector<32x32xbf16>, vector<16x32xf32> -> vector<16x32xf32>
    %42 = arith.addf %36, %41 : vector<16x32xf32>
    %c0_49 = arith.constant 0 : index
    %c1_50 = arith.constant 1 : index
    %c4_51 = arith.constant 4 : index
    %c0_52 = arith.constant 0 : index
    %43 = vector.load %arg1[%c0_49, %c1_50, %c4_51, %c0_52] : memref<1x6x20x32xbf16, #tpu.memory_space<vmem>>, vector<1x1x16x32xbf16>
    %44 = vector.shape_cast %43 : vector<1x1x16x32xbf16> to vector<16x32xbf16>
    %c7 = arith.constant 7 : index
    %c0_53 = arith.constant 0 : index
    %c0_54 = arith.constant 0 : index
    %45 = vector.load %arg2[%c7, %c0_53, %c0_54] : memref<9x32x32xbf16, #tpu.memory_space<vmem>>, vector<1x32x32xbf16>
    %46 = vector.shape_cast %45 : vector<1x32x32xbf16> to vector<32x32xbf16>
    %cst_55 = arith.constant dense<0.000000e+00> : vector<16x32xf32>
    %47 = tpu.matmul %44, %46, %cst_55 {dimension_numbers = #tpu.dot_dimension_numbers<[1], [0], [0], [1], [0, 0, 1, 1], [], []>} : vector<16x32xbf16>, vector<32x32xbf16>, vector<16x32xf32> -> vector<16x32xf32>
    %48 = arith.addf %42, %47 : vector<16x32xf32>
    %c0_56 = arith.constant 0 : index
    %c2_57 = arith.constant 2 : index
    %c4_58 = arith.constant 4 : index
    %c0_59 = arith.constant 0 : index
    %49 = vector.load %arg1[%c0_56, %c2_57, %c4_58, %c0_59] : memref<1x6x20x32xbf16, #tpu.memory_space<vmem>>, vector<1x1x16x32xbf16>
    %50 = vector.shape_cast %49 : vector<1x1x16x32xbf16> to vector<16x32xbf16>
    %c8 = arith.constant 8 : index
    %c0_60 = arith.constant 0 : index
    %c0_61 = arith.constant 0 : index
    %51 = vector.load %arg2[%c8, %c0_60, %c0_61] : memref<9x32x32xbf16, #tpu.memory_space<vmem>>, vector<1x32x32xbf16>
    %52 = vector.shape_cast %51 : vector<1x32x32xbf16> to vector<32x32xbf16>
    %cst_62 = arith.constant dense<0.000000e+00> : vector<16x32xf32>
    %53 = tpu.matmul %50, %52, %cst_62 {dimension_numbers = #tpu.dot_dimension_numbers<[1], [0], [0], [1], [0, 0, 1, 1], [], []>} : vector<16x32xbf16>, vector<32x32xbf16>, vector<16x32xf32> -> vector<16x32xf32>
    %54 = arith.addf %48, %53 : vector<16x32xf32>
    %c0_63 = arith.constant 0 : index
    %c0_64 = arith.constant 0 : index
    %55 = vector.load %arg3[%c0_63, %c0_64] : memref<1x32xf32, #tpu.memory_space<vmem>>, vector<1x32xf32>
    %56 = vector.broadcast %55 : vector<1x32xf32> to vector<16x32xf32>
    %57 = arith.addf %54, %56 : vector<16x32xf32>
    %cst_65 = arith.constant 0.000000e+00 : f32
    %58 = vector.broadcast %cst_65 : f32 to vector<16x32xf32>
    %59 = arith.maximumf %57, %58 : vector<16x32xf32>
    %cst_66 = arith.constant dense<0.000000e+00> : vector<32xf32>
    %60 = vector.multi_reduction <add>, %59, %cst_66 [0] : vector<16x32xf32> to vector<32xf32>
    %61 = vector.shape_cast %60 : vector<32xf32> to vector<1x32xf32>
    %62 = arith.mulf %59, %59 : vector<16x32xf32>
    %cst_67 = arith.constant dense<0.000000e+00> : vector<32xf32>
    %63 = vector.multi_reduction <add>, %62, %cst_67 [0] : vector<16x32xf32> to vector<32xf32>
    %64 = vector.shape_cast %63 : vector<32xf32> to vector<1x32xf32>
    %cst_68 = arith.constant 6.250000e-02 : f32
    %65 = vector.broadcast %cst_68 : f32 to vector<1x32xf32>
    %66 = arith.mulf %61, %65 : vector<1x32xf32>
    %cst_69 = arith.constant 6.250000e-02 : f32
    %67 = vector.broadcast %cst_69 : f32 to vector<1x32xf32>
    %68 = arith.mulf %64, %67 : vector<1x32xf32>
    %69 = arith.mulf %66, %66 : vector<1x32xf32>
    %70 = arith.subf %68, %69 : vector<1x32xf32>
    %cst_70 = arith.constant 0.000000e+00 : f32
    %71 = vector.broadcast %cst_70 : f32 to vector<1x32xf32>
    %72 = arith.maximumf %70, %71 : vector<1x32xf32>
    %cst_71 = arith.constant 9.99999974E-6 : f32
    %73 = vector.broadcast %cst_71 : f32 to vector<1x32xf32>
    %74 = arith.addf %72, %73 : vector<1x32xf32>
    %75 = math.rsqrt %74 : vector<1x32xf32>
    %c0_72 = arith.constant 0 : index
    %c0_73 = arith.constant 0 : index
    %76 = vector.load %arg4[%c0_72, %c0_73] : memref<1x32xf32, #tpu.memory_space<vmem>>, vector<1x32xf32>
    %77 = arith.mulf %75, %76 : vector<1x32xf32>
    %c0_74 = arith.constant 0 : index
    %c0_75 = arith.constant 0 : index
    %78 = vector.load %arg5[%c0_74, %c0_75] : memref<1x32xf32, #tpu.memory_space<vmem>>, vector<1x32xf32>
    %79 = arith.mulf %66, %77 : vector<1x32xf32>
    %80 = arith.subf %78, %79 : vector<1x32xf32>
    %81 = vector.broadcast %77 : vector<1x32xf32> to vector<16x32xf32>
    %82 = arith.mulf %59, %81 : vector<16x32xf32>
    %83 = vector.broadcast %80 : vector<1x32xf32> to vector<16x32xf32>
    %84 = arith.addf %82, %83 : vector<16x32xf32>
    %c0_76 = arith.constant 0 : index
    %c0_77 = arith.constant 0 : index
    %c0_78 = arith.constant 0 : index
    %85 = vector.load %arg6[%c0_76, %c0_77, %c0_78] : memref<1x16x32xf32, #tpu.memory_space<vmem>>, vector<1x16x32xf32>
    %86 = vector.shape_cast %85 : vector<1x16x32xf32> to vector<16x32xf32>
    %87 = vector.shape_cast %84 : vector<16x32xf32> to vector<1x16x32xf32>
    tpu.vector_store %arg6[%c0_76, %c0_77, %c0_78], %87 {strides = array<i32>} : memref<1x16x32xf32, #tpu.memory_space<vmem>>, vector<1x16x32xf32>,
    return
  }
  func.func @transform_0(%arg0: i32) -> (i32, i32, i32, i32) {
    %c0_i32 = arith.constant 0 : i32
    %c0_i32_0 = arith.constant 0 : i32
    %c0_i32_1 = arith.constant 0 : i32
    %c0_i32_2 = arith.constant 0 : i32
    return %arg0, %c0_i32, %c0_i32_0, %c0_i32_1 : i32, i32, i32, i32
  }
  func.func @transform_1(%arg0: i32) -> (i32, i32, i32) {
    %c0_i32 = arith.constant 0 : i32
    %c0_i32_0 = arith.constant 0 : i32
    %c0_i32_1 = arith.constant 0 : i32
    %c0_i32_2 = arith.constant 0 : i32
    return %c0_i32, %c0_i32_0, %c0_i32_1 : i32, i32, i32
  }
  func.func @transform_2(%arg0: i32) -> (i32, i32) {
    %c0_i32 = arith.constant 0 : i32
    %c0_i32_0 = arith.constant 0 : i32
    %c0_i32_1 = arith.constant 0 : i32
    return %c0_i32, %c0_i32_0 : i32, i32
  }
  func.func @transform_3(%arg0: i32) -> (i32, i32) {
    %c0_i32 = arith.constant 0 : i32
    %c0_i32_0 = arith.constant 0 : i32
    %c0_i32_1 = arith.constant 0 : i32
    return %c0_i32, %c0_i32_0 : i32, i32
  }
  func.func @transform_4(%arg0: i32) -> (i32, i32) {
    %c0_i32 = arith.constant 0 : i32
    %c0_i32_0 = arith.constant 0 : i32
    %c0_i32_1 = arith.constant 0 : i32
    return %c0_i32, %c0_i32_0 : i32, i32
  }
  func.func @transform_5(%arg0: i32) -> (i32, i32, i32) {
    %c0_i32 = arith.constant 0 : i32
    %c0_i32_0 = arith.constant 0 : i32
    %c0_i32_1 = arith.constant 0 : i32
    return %arg0, %c0_i32, %c0_i32_0 : i32, i32, i32
  }
}

module attributes {stable_mosaic.version = 11 : i64} {
  func.func @_stage_kernel(%arg0: i32, %arg1: memref<1x6x6x32xbf16, #tpu.memory_space<vmem>>, %arg2: memref<9x32x32xbf16, #tpu.memory_space<vmem>>, %arg3: memref<1x32xf32, #tpu.memory_space<vmem>>, %arg4: memref<1x32xf32, #tpu.memory_space<vmem>>, %arg5: memref<1x32xf32, #tpu.memory_space<vmem>>, %arg6: memref<1x4x32xf32, #tpu.memory_space<vmem>>) attributes {dimension_semantics = [#tpu.dimension_semantics<parallel>], iteration_bounds = array<i64: 2>, scalar_prefetch = 0 : i64, scratch_operands = 0 : i64, tpu.core_type = #tpu.core_type<tc>, window_params = [{transform_indices = @transform_0, window_bounds = array<i64: 1, 6, 6, 32>}, {pipeline_mode = #tpu.pipeline_mode<synchronous>, transform_indices = @transform_1, window_bounds = array<i64: 9, 32, 32>}, {pipeline_mode = #tpu.pipeline_mode<synchronous>, transform_indices = @transform_2, window_bounds = array<i64: 1, 32>}, {pipeline_mode = #tpu.pipeline_mode<synchronous>, transform_indices = @transform_3, window_bounds = array<i64: 1, 32>}, {pipeline_mode = #tpu.pipeline_mode<synchronous>, transform_indices = @transform_4, window_bounds = array<i64: 1, 32>}, {transform_indices = @transform_5, window_bounds = array<i64: 1, 4, 32>}]} {
    %cst = arith.constant 0.000000e+00 : f32
    %0 = vector.broadcast %cst : f32 to vector<4x32xf32>
    %c0 = arith.constant 0 : index
    %c0_0 = arith.constant 0 : index
    %c0_1 = arith.constant 0 : index
    %c0_2 = arith.constant 0 : index
    %1 = vector.load %arg1[%c0, %c0_0, %c0_1, %c0_2] : memref<1x6x6x32xbf16, #tpu.memory_space<vmem>>, vector<1x1x4x32xbf16>
    %2 = vector.shape_cast %1 : vector<1x1x4x32xbf16> to vector<4x32xbf16>
    %c0_3 = arith.constant 0 : index
    %c0_4 = arith.constant 0 : index
    %c0_5 = arith.constant 0 : index
    %3 = vector.load %arg2[%c0_3, %c0_4, %c0_5] : memref<9x32x32xbf16, #tpu.memory_space<vmem>>, vector<1x32x32xbf16>
    %4 = vector.shape_cast %3 : vector<1x32x32xbf16> to vector<32x32xbf16>
    %cst_6 = arith.constant dense<0.000000e+00> : vector<4x32xf32>
    %5 = tpu.matmul %2, %4, %cst_6 {dimension_numbers = #tpu.dot_dimension_numbers<[1], [0], [0], [1], [0, 0, 1, 1], [], []>} : vector<4x32xbf16>, vector<32x32xbf16>, vector<4x32xf32> -> vector<4x32xf32>
    %6 = arith.addf %0, %5 : vector<4x32xf32>
    %c0_7 = arith.constant 0 : index
    %c1 = arith.constant 1 : index
    %c0_8 = arith.constant 0 : index
    %c0_9 = arith.constant 0 : index
    %7 = vector.load %arg1[%c0_7, %c1, %c0_8, %c0_9] : memref<1x6x6x32xbf16, #tpu.memory_space<vmem>>, vector<1x1x4x32xbf16>
    %8 = vector.shape_cast %7 : vector<1x1x4x32xbf16> to vector<4x32xbf16>
    %c1_10 = arith.constant 1 : index
    %c0_11 = arith.constant 0 : index
    %c0_12 = arith.constant 0 : index
    %9 = vector.load %arg2[%c1_10, %c0_11, %c0_12] : memref<9x32x32xbf16, #tpu.memory_space<vmem>>, vector<1x32x32xbf16>
    %10 = vector.shape_cast %9 : vector<1x32x32xbf16> to vector<32x32xbf16>
    %cst_13 = arith.constant dense<0.000000e+00> : vector<4x32xf32>
    %11 = tpu.matmul %8, %10, %cst_13 {dimension_numbers = #tpu.dot_dimension_numbers<[1], [0], [0], [1], [0, 0, 1, 1], [], []>} : vector<4x32xbf16>, vector<32x32xbf16>, vector<4x32xf32> -> vector<4x32xf32>
    %12 = arith.addf %6, %11 : vector<4x32xf32>
    %c0_14 = arith.constant 0 : index
    %c2 = arith.constant 2 : index
    %c0_15 = arith.constant 0 : index
    %c0_16 = arith.constant 0 : index
    %13 = vector.load %arg1[%c0_14, %c2, %c0_15, %c0_16] : memref<1x6x6x32xbf16, #tpu.memory_space<vmem>>, vector<1x1x4x32xbf16>
    %14 = vector.shape_cast %13 : vector<1x1x4x32xbf16> to vector<4x32xbf16>
    %c2_17 = arith.constant 2 : index
    %c0_18 = arith.constant 0 : index
    %c0_19 = arith.constant 0 : index
    %15 = vector.load %arg2[%c2_17, %c0_18, %c0_19] : memref<9x32x32xbf16, #tpu.memory_space<vmem>>, vector<1x32x32xbf16>
    %16 = vector.shape_cast %15 : vector<1x32x32xbf16> to vector<32x32xbf16>
    %cst_20 = arith.constant dense<0.000000e+00> : vector<4x32xf32>
    %17 = tpu.matmul %14, %16, %cst_20 {dimension_numbers = #tpu.dot_dimension_numbers<[1], [0], [0], [1], [0, 0, 1, 1], [], []>} : vector<4x32xbf16>, vector<32x32xbf16>, vector<4x32xf32> -> vector<4x32xf32>
    %18 = arith.addf %12, %17 : vector<4x32xf32>
    %c0_21 = arith.constant 0 : index
    %c3 = arith.constant 3 : index
    %c0_22 = arith.constant 0 : index
    %c0_23 = arith.constant 0 : index
    %19 = vector.load %arg1[%c0_21, %c3, %c0_22, %c0_23] : memref<1x6x6x32xbf16, #tpu.memory_space<vmem>>, vector<1x1x4x32xbf16>
    %20 = vector.shape_cast %19 : vector<1x1x4x32xbf16> to vector<4x32xbf16>
    %c3_24 = arith.constant 3 : index
    %c0_25 = arith.constant 0 : index
    %c0_26 = arith.constant 0 : index
    %21 = vector.load %arg2[%c3_24, %c0_25, %c0_26] : memref<9x32x32xbf16, #tpu.memory_space<vmem>>, vector<1x32x32xbf16>
    %22 = vector.shape_cast %21 : vector<1x32x32xbf16> to vector<32x32xbf16>
    %cst_27 = arith.constant dense<0.000000e+00> : vector<4x32xf32>
    %23 = tpu.matmul %20, %22, %cst_27 {dimension_numbers = #tpu.dot_dimension_numbers<[1], [0], [0], [1], [0, 0, 1, 1], [], []>} : vector<4x32xbf16>, vector<32x32xbf16>, vector<4x32xf32> -> vector<4x32xf32>
    %24 = arith.addf %18, %23 : vector<4x32xf32>
    %c0_28 = arith.constant 0 : index
    %c4 = arith.constant 4 : index
    %c0_29 = arith.constant 0 : index
    %c0_30 = arith.constant 0 : index
    %25 = vector.load %arg1[%c0_28, %c4, %c0_29, %c0_30] : memref<1x6x6x32xbf16, #tpu.memory_space<vmem>>, vector<1x1x4x32xbf16>
    %26 = vector.shape_cast %25 : vector<1x1x4x32xbf16> to vector<4x32xbf16>
    %c4_31 = arith.constant 4 : index
    %c0_32 = arith.constant 0 : index
    %c0_33 = arith.constant 0 : index
    %27 = vector.load %arg2[%c4_31, %c0_32, %c0_33] : memref<9x32x32xbf16, #tpu.memory_space<vmem>>, vector<1x32x32xbf16>
    %28 = vector.shape_cast %27 : vector<1x32x32xbf16> to vector<32x32xbf16>
    %cst_34 = arith.constant dense<0.000000e+00> : vector<4x32xf32>
    %29 = tpu.matmul %26, %28, %cst_34 {dimension_numbers = #tpu.dot_dimension_numbers<[1], [0], [0], [1], [0, 0, 1, 1], [], []>} : vector<4x32xbf16>, vector<32x32xbf16>, vector<4x32xf32> -> vector<4x32xf32>
    %30 = arith.addf %24, %29 : vector<4x32xf32>
    %c0_35 = arith.constant 0 : index
    %c5 = arith.constant 5 : index
    %c0_36 = arith.constant 0 : index
    %c0_37 = arith.constant 0 : index
    %31 = vector.load %arg1[%c0_35, %c5, %c0_36, %c0_37] : memref<1x6x6x32xbf16, #tpu.memory_space<vmem>>, vector<1x1x4x32xbf16>
    %32 = vector.shape_cast %31 : vector<1x1x4x32xbf16> to vector<4x32xbf16>
    %c5_38 = arith.constant 5 : index
    %c0_39 = arith.constant 0 : index
    %c0_40 = arith.constant 0 : index
    %33 = vector.load %arg2[%c5_38, %c0_39, %c0_40] : memref<9x32x32xbf16, #tpu.memory_space<vmem>>, vector<1x32x32xbf16>
    %34 = vector.shape_cast %33 : vector<1x32x32xbf16> to vector<32x32xbf16>
    %cst_41 = arith.constant dense<0.000000e+00> : vector<4x32xf32>
    %35 = tpu.matmul %32, %34, %cst_41 {dimension_numbers = #tpu.dot_dimension_numbers<[1], [0], [0], [1], [0, 0, 1, 1], [], []>} : vector<4x32xbf16>, vector<32x32xbf16>, vector<4x32xf32> -> vector<4x32xf32>
    %36 = arith.addf %30, %35 : vector<4x32xf32>
    %c0_42 = arith.constant 0 : index
    %c0_43 = arith.constant 0 : index
    %c2_44 = arith.constant 2 : index
    %c0_45 = arith.constant 0 : index
    %37 = vector.load %arg1[%c0_42, %c0_43, %c2_44, %c0_45] : memref<1x6x6x32xbf16, #tpu.memory_space<vmem>>, vector<1x1x4x32xbf16>
    %38 = vector.shape_cast %37 : vector<1x1x4x32xbf16> to vector<4x32xbf16>
    %c6 = arith.constant 6 : index
    %c0_46 = arith.constant 0 : index
    %c0_47 = arith.constant 0 : index
    %39 = vector.load %arg2[%c6, %c0_46, %c0_47] : memref<9x32x32xbf16, #tpu.memory_space<vmem>>, vector<1x32x32xbf16>
    %40 = vector.shape_cast %39 : vector<1x32x32xbf16> to vector<32x32xbf16>
    %cst_48 = arith.constant dense<0.000000e+00> : vector<4x32xf32>
    %41 = tpu.matmul %38, %40, %cst_48 {dimension_numbers = #tpu.dot_dimension_numbers<[1], [0], [0], [1], [0, 0, 1, 1], [], []>} : vector<4x32xbf16>, vector<32x32xbf16>, vector<4x32xf32> -> vector<4x32xf32>
    %42 = arith.addf %36, %41 : vector<4x32xf32>
    %c0_49 = arith.constant 0 : index
    %c1_50 = arith.constant 1 : index
    %c2_51 = arith.constant 2 : index
    %c0_52 = arith.constant 0 : index
    %43 = vector.load %arg1[%c0_49, %c1_50, %c2_51, %c0_52] : memref<1x6x6x32xbf16, #tpu.memory_space<vmem>>, vector<1x1x4x32xbf16>
    %44 = vector.shape_cast %43 : vector<1x1x4x32xbf16> to vector<4x32xbf16>
    %c7 = arith.constant 7 : index
    %c0_53 = arith.constant 0 : index
    %c0_54 = arith.constant 0 : index
    %45 = vector.load %arg2[%c7, %c0_53, %c0_54] : memref<9x32x32xbf16, #tpu.memory_space<vmem>>, vector<1x32x32xbf16>
    %46 = vector.shape_cast %45 : vector<1x32x32xbf16> to vector<32x32xbf16>
    %cst_55 = arith.constant dense<0.000000e+00> : vector<4x32xf32>
    %47 = tpu.matmul %44, %46, %cst_55 {dimension_numbers = #tpu.dot_dimension_numbers<[1], [0], [0], [1], [0, 0, 1, 1], [], []>} : vector<4x32xbf16>, vector<32x32xbf16>, vector<4x32xf32> -> vector<4x32xf32>
    %48 = arith.addf %42, %47 : vector<4x32xf32>
    %c0_56 = arith.constant 0 : index
    %c2_57 = arith.constant 2 : index
    %c2_58 = arith.constant 2 : index
    %c0_59 = arith.constant 0 : index
    %49 = vector.load %arg1[%c0_56, %c2_57, %c2_58, %c0_59] : memref<1x6x6x32xbf16, #tpu.memory_space<vmem>>, vector<1x1x4x32xbf16>
    %50 = vector.shape_cast %49 : vector<1x1x4x32xbf16> to vector<4x32xbf16>
    %c8 = arith.constant 8 : index
    %c0_60 = arith.constant 0 : index
    %c0_61 = arith.constant 0 : index
    %51 = vector.load %arg2[%c8, %c0_60, %c0_61] : memref<9x32x32xbf16, #tpu.memory_space<vmem>>, vector<1x32x32xbf16>
    %52 = vector.shape_cast %51 : vector<1x32x32xbf16> to vector<32x32xbf16>
    %cst_62 = arith.constant dense<0.000000e+00> : vector<4x32xf32>
    %53 = tpu.matmul %50, %52, %cst_62 {dimension_numbers = #tpu.dot_dimension_numbers<[1], [0], [0], [1], [0, 0, 1, 1], [], []>} : vector<4x32xbf16>, vector<32x32xbf16>, vector<4x32xf32> -> vector<4x32xf32>
    %54 = arith.addf %48, %53 : vector<4x32xf32>
    %c0_63 = arith.constant 0 : index
    %c0_64 = arith.constant 0 : index
    %55 = vector.load %arg3[%c0_63, %c0_64] : memref<1x32xf32, #tpu.memory_space<vmem>>, vector<1x32xf32>
    %56 = vector.broadcast %55 : vector<1x32xf32> to vector<4x32xf32>
    %57 = arith.addf %54, %56 : vector<4x32xf32>
    %cst_65 = arith.constant 0.000000e+00 : f32
    %58 = vector.broadcast %cst_65 : f32 to vector<4x32xf32>
    %59 = arith.maximumf %57, %58 : vector<4x32xf32>
    %cst_66 = arith.constant dense<0.000000e+00> : vector<32xf32>
    %60 = vector.multi_reduction <add>, %59, %cst_66 [0] : vector<4x32xf32> to vector<32xf32>
    %61 = vector.shape_cast %60 : vector<32xf32> to vector<1x32xf32>
    %62 = arith.mulf %59, %59 : vector<4x32xf32>
    %cst_67 = arith.constant dense<0.000000e+00> : vector<32xf32>
    %63 = vector.multi_reduction <add>, %62, %cst_67 [0] : vector<4x32xf32> to vector<32xf32>
    %64 = vector.shape_cast %63 : vector<32xf32> to vector<1x32xf32>
    %cst_68 = arith.constant 2.500000e-01 : f32
    %65 = vector.broadcast %cst_68 : f32 to vector<1x32xf32>
    %66 = arith.mulf %61, %65 : vector<1x32xf32>
    %cst_69 = arith.constant 2.500000e-01 : f32
    %67 = vector.broadcast %cst_69 : f32 to vector<1x32xf32>
    %68 = arith.mulf %64, %67 : vector<1x32xf32>
    %69 = arith.mulf %66, %66 : vector<1x32xf32>
    %70 = arith.subf %68, %69 : vector<1x32xf32>
    %cst_70 = arith.constant 0.000000e+00 : f32
    %71 = vector.broadcast %cst_70 : f32 to vector<1x32xf32>
    %72 = arith.maximumf %70, %71 : vector<1x32xf32>
    %cst_71 = arith.constant 9.99999974E-6 : f32
    %73 = vector.broadcast %cst_71 : f32 to vector<1x32xf32>
    %74 = arith.addf %72, %73 : vector<1x32xf32>
    %75 = math.rsqrt %74 : vector<1x32xf32>
    %c0_72 = arith.constant 0 : index
    %c0_73 = arith.constant 0 : index
    %76 = vector.load %arg4[%c0_72, %c0_73] : memref<1x32xf32, #tpu.memory_space<vmem>>, vector<1x32xf32>
    %77 = arith.mulf %75, %76 : vector<1x32xf32>
    %c0_74 = arith.constant 0 : index
    %c0_75 = arith.constant 0 : index
    %78 = vector.load %arg5[%c0_74, %c0_75] : memref<1x32xf32, #tpu.memory_space<vmem>>, vector<1x32xf32>
    %79 = arith.mulf %66, %77 : vector<1x32xf32>
    %80 = arith.subf %78, %79 : vector<1x32xf32>
    %81 = vector.broadcast %77 : vector<1x32xf32> to vector<4x32xf32>
    %82 = arith.mulf %59, %81 : vector<4x32xf32>
    %83 = vector.broadcast %80 : vector<1x32xf32> to vector<4x32xf32>
    %84 = arith.addf %82, %83 : vector<4x32xf32>
    %c0_76 = arith.constant 0 : index
    %c0_77 = arith.constant 0 : index
    %c0_78 = arith.constant 0 : index
    %85 = vector.load %arg6[%c0_76, %c0_77, %c0_78] : memref<1x4x32xf32, #tpu.memory_space<vmem>>, vector<1x4x32xf32>
    %86 = vector.shape_cast %85 : vector<1x4x32xf32> to vector<4x32xf32>
    %87 = vector.shape_cast %84 : vector<4x32xf32> to vector<1x4x32xf32>
    tpu.vector_store %arg6[%c0_76, %c0_77, %c0_78], %87 {strides = array<i32>} : memref<1x4x32xf32, #tpu.memory_space<vmem>>, vector<1x4x32xf32>,
    return
  }
  func.func @transform_0(%arg0: i32) -> (i32, i32, i32, i32) {
    %c0_i32 = arith.constant 0 : i32
    %c0_i32_0 = arith.constant 0 : i32
    %c0_i32_1 = arith.constant 0 : i32
    %c0_i32_2 = arith.constant 0 : i32
    return %arg0, %c0_i32, %c0_i32_0, %c0_i32_1 : i32, i32, i32, i32
  }
  func.func @transform_1(%arg0: i32) -> (i32, i32, i32) {
    %c0_i32 = arith.constant 0 : i32
    %c0_i32_0 = arith.constant 0 : i32
    %c0_i32_1 = arith.constant 0 : i32
    %c0_i32_2 = arith.constant 0 : i32
    return %c0_i32, %c0_i32_0, %c0_i32_1 : i32, i32, i32
  }
  func.func @transform_2(%arg0: i32) -> (i32, i32) {
    %c0_i32 = arith.constant 0 : i32
    %c0_i32_0 = arith.constant 0 : i32
    %c0_i32_1 = arith.constant 0 : i32
    return %c0_i32, %c0_i32_0 : i32, i32
  }
  func.func @transform_3(%arg0: i32) -> (i32, i32) {
    %c0_i32 = arith.constant 0 : i32
    %c0_i32_0 = arith.constant 0 : i32
    %c0_i32_1 = arith.constant 0 : i32
    return %c0_i32, %c0_i32_0 : i32, i32
  }
  func.func @transform_4(%arg0: i32) -> (i32, i32) {
    %c0_i32 = arith.constant 0 : i32
    %c0_i32_0 = arith.constant 0 : i32
    %c0_i32_1 = arith.constant 0 : i32
    return %c0_i32, %c0_i32_0 : i32, i32
  }
  func.func @transform_5(%arg0: i32) -> (i32, i32, i32) {
    %c0_i32 = arith.constant 0 : i32
    %c0_i32_0 = arith.constant 0 : i32
    %c0_i32_1 = arith.constant 0 : i32
    return %arg0, %c0_i32, %c0_i32_0 : i32, i32, i32
  }
}

</mosaic_0001>

<bundles_post_ra>
// kernel: multi_scale_downsampling.4
= control target key start
LH: loop header
LB: loop body
LE: loop exit
PB: predicated region body
PF: predicated region fallthrough
CT: control target
= control target key end

     0   :  { %s1003_s18 = smov 0   ;;  %s1122_s0 = inlined_call_operand.vmem [shape: bf16[2,6,20,32], index: 0, kind: input, shape index: {}]   ;;  %s1123_s1 = inlined_call_operand.vmem [shape: bf16[9,32,32], index: 1, kind: input, shape index: {}]   ;;  %s1124_s2 = inlined_call_operand.vmem [shape: f32[1,32], index: 2, kind: input, shape index: {}]   ;;  %s1125_s3 = inlined_call_operand.vmem [shape: f32[1,32], index: 3, kind: input, shape index: {}]   ;;  %s1126_s4 = inlined_call_operand.vmem [shape: f32[1,32], index: 4, kind: input, shape index: {}]   ;;  %s1127_s5 = inlined_call_operand.vmem [shape: f32[2,16,32], index: 5, kind: output, shape index: {}]  }
   0x1 LB: > { %s750_s19 = sadd.s32 4294967295, %s971_s18   ;;  %p754_p0 = scmp.ge.s32.totalorder %s971_s18, 1  ;;  %s971_s18 = sphi %s1003_s18, %s15_s18  }
   0x2   : > { %p187_p1 = scmp.lt.s32.totalorder %s971_s18, 3 }
   0x4   : > { %p188_p2 = pnand %p754_p0, %p187_p1 }
   0x5   : > { %p215_p3 = scmp.lt.s32.totalorder (!%p188_p2), %s750_s19, 1 }
   0x6   : > { %191 = sbr.rel (%p188_p2) target bundleno = 246 (0xf6), region = 40 }
   0xb   : > { %v931_v0 = vld [vmem:[%s1123_s1 + $0x18] sm:$0xff]  ;;  %v928_v1 = vld [vmem:[%s1123_s1 + $0x8] sm:$0xff]  ;;  %v930_v4 = vld [vmem:[%s1123_s1 + $0x10] sm:$0xff]  ;;  %s1129_s19 = smov (!%p215_p3, %s750_s19), 1  ;;  %vm257_vm0 = vcmask 261120   ;;  %vm501_vm1 = vcmask 1045504  }
   0xc   : > { %v934_v2 = vld [vmem:[%s1123_s1 + $0x28] sm:$0xff]  ;;  %v937_v3 = vld [vmem:[%s1123_s1 + $0x38] sm:$0xff]  ;;  %267 = vmatpush.bf16.msra.mxu0 %v931_v0  ;;  %301 = vmatpush.bf16.msra.mxu1 %v928_v1  ;;  %v927_v5 = vld [vmem:[%s1123_s1] sm:$0xff]  ;;  %s953_s11 = smul.u32 72, %s1129_s19 }
   0xd   : > { %343 = vmatpush.bf16.msra.mxu2 %v934_v2  ;;  %387 = vmatpush.bf16.msra.mxu3 %v937_v3  ;;  %v933_v6 = vld [vmem:[%s1123_s1 + $0x20] sm:$0xff]  ;;  %v936_v7 = vld [vmem:[%s1123_s1 + $0x30] sm:$0xff]  ;;  %v940_v8 = vld [vmem:[%s1123_s1 + $0x48] sm:$0xff] }
   0xe   : > { %v946_v9 = vld [vmem:[%s1123_s1 + $0x68] sm:$0xff]  ;;  %s1047_s20 = scalar_lea.vmem %s1122_s0, %s953_s11  ;;  %v949_v10 = vld [vmem:[%s1123_s1 + $0x78] sm:$0xff]  ;;  %v939_v16 = vld [vmem:[%s1123_s1 + $0x40] sm:$0xff] }
   0xf   : > { %v943_v11 = vld [vmem:[%s1123_s1 + $0x58] sm:$0xff]  ;;  %v929_v12 = vld [vmem:[%s1047_s20 + $0xc] sm:$0xff]  ;;  %v926_v13 = vld [vmem:[%s1047_s20] sm:$0xff] }
  0x10   : > { %268 = vmatpush.bf16.msra.mxu0 %v930_v4  ;;  %302 = vmatpush.bf16.msra.mxu1 %v927_v5  ;;  %v932_v14 = vld [vmem:[%s1047_s20 + $0x18] sm:$0xff]  ;;  %v935_v15 = vld [vmem:[%s1047_s20 + $0x24] sm:$0xff]  ;;  %v948_v20 = vld [vmem:[%s1123_s1 + $0x70] sm:$0xff] }
  0x11   : > { %344 = vmatpush.bf16.msra.mxu2 %v933_v6  ;;  %388 = vmatpush.bf16.msra.mxu3 %v936_v7  ;;  %v945_v17 = vld [vmem:[%s1123_s1 + $0x60] sm:$0xff]  ;;  %v487_v18 = vld [vmem:[%s1047_s20 + $0x8] sm:$0x3]  ;;  %v885_v21 = vld [vmem:[%s1047_s20 + $0x14] sm:$0x3] }
  0x12   : > { %v952_v19 = vld [vmem:[%s1123_s1 + $0x88] sm:$0xff]  ;;  %v942_v22 = vld [vmem:[%s1123_s1 + $0x50] sm:$0xff]  ;;  %v872_v23 = vld [vmem:[%s1047_s20] sm:$0xc]  ;;  %v498_v25 = vunpack.c.l.b16 %v487_v18  ;;  %v549_v26 = vunpack.c.l.b16 %v885_v21 }
  0x13   : > { %776 = vmatmul.msk.bf16.vlgmr.msra.gmra.mxu0 %vm257_vm0, %v929_v12  ;;  %789 = vmatmul.msk.bf16.vlgmr.msra.gmra.mxu1 %vm257_vm0, %v926_v13  ;;  %v944_v24 = vld [vmem:[%s1047_s20] sm:$0xf0]  ;;  %v892_v27 = vld [vmem:[%s1047_s20 + $0xc] sm:$0xc]  ;;  %v947_v28 = vld [vmem:[%s1047_s20 + $0xc] sm:$0xf0] }
  0x14   : > { %431 = vmatpush.bf16.msrb.mxu0 %v940_v8  ;;  %808 = vmatmul.msk.bf16.vlgmr.msra.gmra.mxu2 %vm257_vm0, %v932_v14  ;;  %v951_v29 = vld [vmem:[%s1123_s1 + $0x80] sm:$0xff]  ;;  %v873_v30 = vor.u32 %v944_v24, %v872_v23  ;;  %v500_v31 = vpack.c.b16 %v498_v25, %v498_v25  ;;  %v893_v32 = vor.u32 %v947_v28, %v892_v27  ;;  %v938_v38 = vld [vmem:[%s1047_s20 + $0x30] sm:$0xff]  ;;  %v912_v44 = vld [vmem:[%s1047_s20 + $0x18] sm:$0xc] }
  0x15   : > { %526 = vmatpush.bf16.msrb.mxu2 %v946_v9  ;;  %827 = vmatmul.msk.bf16.vlgmr.msra.gmra.mxu3 %vm257_vm0, %v935_v15  ;;  %v551_v33 = vpack.c.b16 %v549_v26, %v549_v26  ;;  %v941_v39 = vld [vmem:[%s1047_s20 + $0x3c] sm:$0xff] }
  0x16   : > { %576 = vmatpush.bf16.msrb.mxu3 %v949_v10  ;;  %475 = vmatpush.bf16.msrb.mxu1 %v943_v11  ;;  %v502_v34 = vrot.slane %v873_v30, 2  ;;  %v503_v35 = vrot.slane %v500_v31, 2  ;;  %v552_v36 = vrot.slane %v893_v32, 2  ;;  %v905_v42 = vld [vmem:[%s1047_s20 + $0x20] sm:$0x3] }
  0x17   : > { %v553_v37 = vrot.slane %v551_v33, 2  ;;  %v599_v43 = vunpack.c.l.b16 %v905_v42  ;;  %v950_v45 = vld [vmem:[%s1047_s20 + $0x18] sm:$0xf0]  ;;  %s925_s20 = sshll.u32 %s1129_s19, 4 }
  0x18   : > { %432 = vmatpush.bf16.msrb.mxu0 %v939_v16  ;;  %v504_v40 = vsel %vm501_vm1, %v502_v34, %v503_v35  ;;  %v913_v46 = vor.u32 %v950_v45, %v912_v44  ;;  %v962_v16 = vld [vmem:[%s1124_s2] ss:$0 sm:$0xff]  ;;  %s224_s23 = scalar_lea.vmem %s1127_s5, %s925_s20 }
  0x19   : > { %527 = vmatpush.bf16.msrb.mxu2 %v945_v17  ;;  %v554_v41 = vsel %vm501_vm1, %v552_v36, %v553_v37  ;;  %v601_v47 = vpack.c.b16 %v599_v43, %v599_v43 }
  0x1a   : > { %577 = vmatpush.bf16.msrb.mxu3 %v948_v20  ;;  %476 = vmatpush.bf16.msrb.mxu1 %v942_v22  ;;  %v602_v48 = vrot.slane %v913_v46, 2 }
  0x1b   : > { %v603_v49 = vrot.slane %v601_v47, 2 }
  0x1c   : > { %626 = vmatpush.bf16.msra.mxu0 %v952_v19 }
  0x1d   : > { %v604_v50 = vsel %vm501_vm1, %v602_v48, %v603_v49 }
  0x20   : > { %627 = vmatpush.bf16.msra.mxu0 %v951_v29 }
  0x23   : > { %846 = vmatmul.msk.bf16.vlgmr.msrb.gmra.mxu0 %vm257_vm0, %v938_v38  ;;  %865 = vmatmul.msk.bf16.vlgmr.msrb.gmra.mxu1 %vm257_vm0, %v941_v39 }
  0x24   : > { %882 = vmatmul.msk.bf16.vlgmr.msrb.gmra.mxu2 %vm257_vm0, %v504_v40 }
  0x25   : > { %902 = vmatmul.msk.bf16.vlgmr.msrb.gmra.mxu3 %vm257_vm0, %v554_v41 }
  0x33   : > { %922 = vmatmul.msk.bf16.vlgmr.msra.gmra.mxu0 %vm257_vm0, %v604_v50 }
  0x90   : > { %v270_v51 = vpop.f32.mrf.mxu0  ;;  %v304_v52 = vpop.f32.mrf.mxu1 }
  0x91   : > { %v305_v57 = vadd.f32 %v304_v52, %v270_v51 }
  0x97   : > { %v346_v53 = vpop.f32.mrf.mxu2 }
  0x98   : > { %v390_v54 = vpop.f32.mrf.mxu3  ;;  %v272_v55 = vpop.f32.mrf.mxu0  ;;  %v351_v58 = vadd.f32 %v346_v53, %v305_v57 }
  0x99   : > { %v306_v56 = vpop.f32.mrf.mxu1 }
  0x9a   : > { %v395_v62 = vadd.f32 %v390_v54, %v351_v58  ;;  %v307_v0 = vadd.f32 %v306_v56, %v272_v55  ;;  %v680_v58 = vld [vmem:[%s1125_s3] sm:$0x1] }
  0x9f   : > { %v348_v59 = vpop.f32.mrf.mxu2 }
  0xa0   : > { %v434_v60 = vpop.f32.mrf.mxu0  ;;  %v392_v61 = vpop.f32.mrf.mxu3  ;;  %v352_v2 = vadd.f32 %v348_v59, %v307_v0 }
  0xa1   : > { %v478_v63 = vpop.f32.mrf.mxu1  ;;  %v439_v1 = vadd.f32 %v434_v60, %v395_v62 }
  0xa2   : > { %v396_v6 = vadd.f32 %v392_v61, %v352_v2  ;;  %v682_v61 = vld [vmem:[%s1126_s4] sm:$0x1] }
  0xa3   : > { %v483_v5 = vadd.f32 %v478_v63, %v439_v1 }
  0xa7   : > { %v529_v3 = vpop.f32.mrf.mxu2 }
  0xa8   : > { %v436_v4 = vpop.f32.mrf.mxu0  ;;  %v534_v7 = vadd.f32 %v529_v3, %v483_v5  ;;  %v579_v8 = vpop.f32.mrf.mxu3 }
  0xa9   : > { %v440_v9 = vadd.f32 %v436_v4, %v396_v6  ;;  %v480_v10 = vpop.f32.mrf.mxu1 }
  0xaa   : > { %v584_v11 = vadd.f32 %v579_v8, %v534_v7 }
  0xab   : > { %v484_v14 = vadd.f32 %v480_v10, %v440_v9 }
  0xaf   : > { %v531_v12 = vpop.f32.mrf.mxu2 }
  0xb0   : > { %v629_v13 = vpop.f32.mrf.mxu0  ;;  %v535_v17 = vadd.f32 %v531_v12, %v484_v14  ;;  %v581_v19 = vpop.f32.mrf.mxu3 }
  0xb1   : > { %v634_v15 = vadd.f32 %v629_v13, %v584_v11 }
  0xb2   : > { %v585_v20 = vadd.f32 %v581_v19, %v535_v17 }
  0xb3   : > { %v640_v18 = vadd.f32 %v962_v16, %v634_v15 }
  0xb5   : > { %v642_v22 = vmax.f32 %v640_v18, 0.0 }
  0xb7   : > { %v653_v25 = vmul.f32 %v642_v22, %v642_v22  ;;  %v644_v27 = vsel %vm257_vm0, %v642_v22, 0.0 }
  0xb8   : > { %v631_v21 = vpop.f32.mrf.mxu0 }
  0xb9   : > { %v635_v23 = vadd.f32 %v631_v21, %v585_v20  ;;  %v655_v31 = vsel %vm257_vm0, %v653_v25, 0.0 }
  0xbb   : > { %v641_v24 = vadd.f32 %v962_v16, %v635_v23 }
  0xbd   : > { %v643_v26 = vmax.f32 %v641_v24, 0.0 }
  0xbf   : > { %v645_v28 = vsel %vm257_vm0, %v643_v26, 0.0  ;;  %v654_v29 = vmul.f32 %v643_v26, %v643_v26 }
  0xc0   : > { %v646_v30 = vadd.f32 %v645_v28, %v644_v27 }
  0xc1   : > { %v656_v32 = vsel %vm257_vm0, %v654_v29, 0.0 }
  0xc2   : > { %v647_v33 = vrot.slane %v646_v30, 4  ;;  %v657_v34 = vadd.f32 %v656_v32, %v655_v31 }
  0xc4   : > { %v648_v35 = vadd.f32 %v647_v33, %v646_v30  ;;  %v658_v36 = vrot.slane %v657_v34, 4 }
  0xc6   : > { %v649_v37 = vrot.slane %v648_v35, 2  ;;  %v659_v38 = vadd.f32 %v658_v36, %v657_v34 }
  0xc8   : > { %v650_v39 = vadd.f32 %v649_v37, %v648_v35  ;;  %v660_v40 = vrot.slane %v659_v38, 2 }
  0xca   : > { %v651_v41 = vrot.slane %v650_v39, 1  ;;  %v661_v42 = vadd.f32 %v660_v40, %v659_v38 }
  0xcc   : > { %v652_v43 = vadd.f32 %v651_v41, %v650_v39  ;;  %v662_v44 = vrot.slane %v661_v42, 1 }
  0xce   : > { %v663_v45 = vadd.f32 %v662_v44, %v661_v42  ;;  %v664_v46 = vmul.f32 0.0625, %v652_v43 }
  0xd0   : > { %v665_v47 = vmul.f32 0.0625, %v663_v45  ;;  %v666_v48 = vmul.f32 %v664_v46, %v664_v46 }
  0xd2   : > { %v667_v49 = vsub.f32 %v665_v47, %v666_v48 }
  0xd4   : > { %v668_v50 = vmax.f32 %v667_v49, 0.0 }
  0xd6   : > { %v669_v51 = vadd.f32 1e-05, %v668_v50 }
  0xd8   : > { %963 = vrsqrt.f32 %v669_v51  ;;  %vm676_vm3 = vweird.f32 %v669_v51 }
  0xde   : > { %v964_v52 = vpop.eup %963 }
  0xdf   : > { %v671_v53 = vmul.f32 %v964_v52, %v669_v51  ;;  %vm677_vm2 = vweird.f32 %v964_v52 }
  0xe0   : > { %vm678_vm4 = vmor %vm676_vm3, %vm677_vm2 }
  0xe1   : > { %v672_v54 = vmul.f32 %v964_v52, %v671_v53 }
  0xe3   : > { %v673_v55 = vmul.f32 0.5, %v672_v54 }
  0xe5   : > { %v674_v56 = vsub.f32 1.5, %v673_v55 }
  0xe7   : > { %v675_v57 = vmul.f32 %v964_v52, %v674_v56 }
  0xe9   : > { %v679_v59 = vsel %vm678_vm4, %v964_v52, %v675_v57 }
  0xea   : > { %v681_v60 = vmul.f32 %v680_v58, %v679_v59 }
  0xec   : > { %v683_v62 = vmul.f32 %v681_v60, %v664_v46  ;;  %v685_v63 = vperm.slane %v681_v60, 0 }
  0xee   : > { %v684_v0 = vsub.f32 %v682_v61, %v683_v62  ;;  %v686_v1 = vmul.f32 %v685_v63, %v642_v22  ;;  %v687_v2 = vmul.f32 %v685_v63, %v643_v26 }
  0xf0   : > { %v689_v3 = vperm.slane %v684_v0, 0 }
  0xf2   : > { %v691_v4 = vadd.f32 %v689_v3, %v686_v1  ;;  %v692_v5 = vadd.f32 %v689_v3, %v687_v2 }
  0xf4   : > { %693 = vst.msk [vmem:[%s224_s23] sm:$0xff] %vm257_vm0, %v691_v4 }
  0xf5   : > { %694 = vst.msk [vmem:[%s224_s23 + $0x8] sm:$0xff] %vm257_vm0, %v692_v5 }
  0xf6 PF: > { %s15_s18 = sadd.s32 1, %s971_s18  }
  0xf7   : > { %p12_p4 = scmp.ge.s32.totalorder %s15_s18, 4  }
  0xf9   :  { %14 = sbr.rel (!%p12_p4) target bundleno = 1 (0x1), region = 83 }

// kernel: multi_scale_downsampling.3
= control target key start
LH: loop header
LB: loop body
LE: loop exit
PB: predicated region body
PF: predicated region fallthrough
CT: control target
= control target key end

     0   :  { %s1473_s18 = smov 0   ;;  %s1722_s0 = inlined_call_operand.vmem [shape: bf16[2,6,72,4], index: 0, kind: input, shape index: {}]   ;;  %s1723_s1 = inlined_call_operand.vmem [shape: bf16[9,4,32], index: 1, kind: input, shape index: {}]   ;;  %s1724_s2 = inlined_call_operand.vmem [shape: f32[1,32], index: 2, kind: input, shape index: {}]   ;;  %s1725_s3 = inlined_call_operand.vmem [shape: f32[1,32], index: 3, kind: input, shape index: {}]   ;;  %s1726_s4 = inlined_call_operand.vmem [shape: f32[1,32], index: 4, kind: input, shape index: {}]   ;;  %s1727_s5 = inlined_call_operand.vmem [shape: f32[2,64,32], index: 5, kind: output, shape index: {}]  }
   0x1 LB: > { %s1129_s19 = sadd.s32 4294967295, %s1441_s18   ;;  %p1133_p0 = scmp.ge.s32.totalorder %s1441_s18, 1  ;;  %s1441_s18 = sphi %s1473_s18, %s15_s18  }
   0x2   : > { %p187_p1 = scmp.lt.s32.totalorder %s1441_s18, 3 }
   0x4   : > { %p188_p2 = pnand %p1133_p0, %p187_p1 }
   0x5   : > { %p215_p3 = scmp.lt.s32.totalorder (!%p188_p2), %s1129_s19, 1 }
   0x6   : > { %191 = sbr.rel (%p188_p2) target bundleno = 358 (0x166), region = 40 }
   0xb   : > { %v1145_v0 = vld [vmem:[%s1723_s1 + $0x2] sm:$0x3]  ;;  %vm279_vm0 = vcmask 1041408   ;;  %v1194_v2 = vld [vmem:[%s1723_s1 + $0x4] sm:$0x3]  ;;  %s1729_s19 = smov (!%p215_p3, %s1129_s19), 1 }
   0xc   : > { %v281_v1 = vsel %vm279_vm0, %v1145_v0, 0  ;;  %v1223_v3 = vld [vmem:[%s1723_s1 + $0x6] sm:$0x3]  ;;  %v420_v4 = vsel %vm279_vm0, %v1194_v2, 0  ;;  %v234_v6 = vld [vmem:[%s1723_s1] sm:$0x3] }
   0xd   : > { %1420 = vmatpush.bf16.msra.mxu1 %v281_v1  ;;  %1421 = vmatpush.bf16.msra.mxu2 %v281_v1  ;;  %v503_v5 = vsel %vm279_vm0, %v1223_v3, 0  ;;  %v345_v7 = vsel %vm279_vm0, %v234_v6, 0  ;;  %v1252_v8 = vld [vmem:[%s1723_s1 + $0x8] sm:$0x3]  ;;  %s1423_s30 = smul.u32 216, %s1729_s19  ;;  %vm266_vm1 = vcmask 31744  }
   0xe   : > { %1422 = vmatpush.bf16.msra.mxu3 %v281_v1  ;;  %290 = vmatpush.bf16.msra.mxu0 %v281_v1  ;;  %v586_v9 = vsel %vm279_vm0, %v1252_v8, 0  ;;  %v1302_v10 = vld [vmem:[%s1723_s1 + $0xc] sm:$0x3]  ;;  %v1331_v11 = vld [vmem:[%s1723_s1 + $0xe] sm:$0x3]  ;;  %vm974_vm2 = vcmask 261120  }
   0xf   : > { %s1513_s12 = scalar_lea.vmem %s1722_s0, %s1423_s30  ;;  %v1281_v12 = vld [vmem:[%s1723_s1 + $0xa] sm:$0x3]  ;;  %v1360_v13 = vld [vmem:[%s1723_s1 + $0x10] sm:$0x3]  ;;  %v751_v18 = vsel %vm279_vm0, %v1302_v10, 0  ;;  %v833_v19 = vsel %vm279_vm0, %v1331_v11, 0 }
  0x10   : > { %v1389_v14 = vld [vmem:[%s1513_s12 + $0x2c] sm:$0xff]  ;;  %v1390_v15 = vld [vmem:[%s1513_s12 + $0x34] sm:$0xff]  ;;  %v1391_v16 = vld [vmem:[%s1513_s12 + $0x3c] sm:$0xff]  ;;  %v669_v20 = vsel %vm279_vm0, %v1281_v12, 0  ;;  %v915_v21 = vsel %vm279_vm0, %v1360_v13, 0  ;;  %s1383_s25 = sshll.u32 %s1729_s19, 6 }
  0x11   : > { %429 = vmatpush.bf16.msrb.mxu2 %v420_v4  ;;  %354 = vmatpush.bf16.msrb.mxu1 %v345_v7  ;;  %v1388_v17 = vld [vmem:[%s1513_s12 + $0x24] sm:$0xff]  ;;  %v1396_v24 = vld [vmem:[%s1513_s12 + $0x6c] sm:$0xff]  ;;  %v1397_v28 = vld [vmem:[%s1513_s12 + $0x74] sm:$0xff]  ;;  %s224_s19 = scalar_lea.vmem %s1727_s5, %s1383_s25 }
  0x12   : > { %512 = vmatpush.bf16.msrb.mxu3 %v503_v5  ;;  %595 = vmatpush.bf16.msrb.mxu0 %v586_v9  ;;  %v1384_v22 = vld [vmem:[%s1513_s12] sm:$0xff]  ;;  %v1392_v23 = vld [vmem:[%s1513_s12 + $0x48] sm:$0xff]  ;;  %v1400_v25 = vld [vmem:[%s1513_s12 + $0x90] sm:$0xff] }
  0x13   : > { %1163 = vmatmul.msk.bf16.vlgmr.msra.gmra.mxu1 %vm266_vm1, %v1389_v14  ;;  %1164 = vmatmul.msk.bf16.vlgmr.msra.gmra.mxu2 %vm266_vm1, %v1390_v15  ;;  %v1385_v26 = vld [vmem:[%s1513_s12 + $0x8] sm:$0xff]  ;;  %v1393_v27 = vld [vmem:[%s1513_s12 + $0x50] sm:$0xff]  ;;  %v1401_v29 = vld [vmem:[%s1513_s12 + $0x98] sm:$0xff] }
  0x14   : > { %1165 = vmatmul.msk.bf16.vlgmr.msra.gmra.mxu3 %vm266_vm1, %v1391_v16  ;;  %1162 = vmatmul.msk.bf16.vlgmr.msra.gmra.mxu0 %vm266_vm1, %v1388_v17  ;;  %v1386_v30 = vld [vmem:[%s1513_s12 + $0x10] sm:$0xff]  ;;  %v1394_v31 = vld [vmem:[%s1513_s12 + $0x58] sm:$0xff]  ;;  %v1402_v33 = vld [vmem:[%s1513_s12 + $0xa0] sm:$0xff] }
  0x15   : > { %760 = vmatpush.bf16.msra.mxu2 %v751_v18  ;;  %678 = vmatpush.bf16.msra.mxu1 %v669_v20  ;;  %v1398_v32 = vld [vmem:[%s1513_s12 + $0x7c] sm:$0xff]  ;;  %v1399_v36 = vld [vmem:[%s1513_s12 + $0x84] sm:$0xff]  ;;  %v1404_v38 = vld [vmem:[%s1513_s12 + $0xb4] sm:$0xff] }
  0x16   : > { %842 = vmatpush.bf16.msra.mxu3 %v833_v19  ;;  %924 = vmatpush.bf16.msra.mxu0 %v915_v21  ;;  %v1387_v34 = vld [vmem:[%s1513_s12 + $0x18] sm:$0xff]  ;;  %v1395_v35 = vld [vmem:[%s1513_s12 + $0x60] sm:$0xff]  ;;  %v1403_v37 = vld [vmem:[%s1513_s12 + $0xa8] sm:$0xff] }
  0x17   : > { %v1408_v39 = vld [vmem:[%s1513_s12 + $0x4] sm:$0xff]  ;;  %v1416_v41 = vld [vmem:[%s1513_s12 + $0x4c] sm:$0xff]  ;;  %v1405_v42 = vld [vmem:[%s1513_s12 + $0xbc] sm:$0xff] }
  0x18   : > { %v1412_v40 = vld [vmem:[%s1513_s12 + $0x28] sm:$0xff]  ;;  %v1413_v44 = vld [vmem:[%s1513_s12 + $0x30] sm:$0xff]  ;;  %v1414_v48 = vld [vmem:[%s1513_s12 + $0x38] sm:$0xff] }
  0x19   : > { %v1409_v43 = vld [vmem:[%s1513_s12 + $0xc] sm:$0xff]  ;;  %v1417_v45 = vld [vmem:[%s1513_s12 + $0x54] sm:$0xff]  ;;  %v1406_v46 = vld [vmem:[%s1513_s12 + $0xc4] sm:$0xff] }
  0x1a   : > { %v1410_v47 = vld [vmem:[%s1513_s12 + $0x14] sm:$0xff]  ;;  %v1418_v49 = vld [vmem:[%s1513_s12 + $0x5c] sm:$0xff]  ;;  %v1407_v50 = vld [vmem:[%s1513_s12 + $0xcc] sm:$0xff] }
  0x1b   : > { %v1411_v51 = vld [vmem:[%s1513_s12 + $0x1c] sm:$0xff]  ;;  %v1419_v54 = vld [vmem:[%s1513_s12 + $0x64] sm:$0xff] }
  0x1c   : > { %v1415_v53 = vld [vmem:[%s1513_s12 + $0x40] sm:$0xff] }
  0x23   : > { %1182 = vmatmul.msk.bf16.vlgmr.msrb.gmra.mxu1 %vm266_vm1, %v1384_v22  ;;  %1211 = vmatmul.msk.bf16.vlgmr.msrb.gmra.mxu2 %vm266_vm1, %v1392_v23 }
  0x24   : > { %1240 = vmatmul.msk.bf16.vlgmr.msrb.gmra.mxu3 %vm266_vm1, %v1396_v24  ;;  %1269 = vmatmul.msk.bf16.vlgmr.msrb.gmra.mxu0 %vm266_vm1, %v1400_v25 }
  0x33   : > { %1183 = vmatmul.msk.bf16.gmra.mxu1 %vm266_vm1, %v1385_v26  ;;  %1212 = vmatmul.msk.bf16.gmra.mxu2 %vm266_vm1, %v1393_v27 }
  0x34   : > { %1241 = vmatmul.msk.bf16.gmra.mxu3 %vm266_vm1, %v1397_v28  ;;  %1270 = vmatmul.msk.bf16.gmra.mxu0 %vm266_vm1, %v1401_v29 }
  0x43   : > { %1184 = vmatmul.msk.bf16.gmra.mxu1 %vm266_vm1, %v1386_v30  ;;  %1213 = vmatmul.msk.bf16.gmra.mxu2 %vm266_vm1, %v1394_v31 }
  0x44   : > { %1242 = vmatmul.msk.bf16.gmra.mxu3 %vm266_vm1, %v1398_v32  ;;  %1271 = vmatmul.msk.bf16.gmra.mxu0 %vm266_vm1, %v1402_v33 }
  0x53   : > { %1185 = vmatmul.msk.bf16.gmra.mxu1 %vm266_vm1, %v1387_v34  ;;  %1214 = vmatmul.msk.bf16.gmra.mxu2 %vm266_vm1, %v1395_v35 }
  0x54   : > { %1243 = vmatmul.msk.bf16.gmra.mxu3 %vm266_vm1, %v1399_v36  ;;  %1272 = vmatmul.msk.bf16.gmra.mxu0 %vm266_vm1, %v1403_v37 }
  0x63   : > { %1298 = vmatmul.msk.bf16.vlgmr.msra.gmra.mxu1 %vm266_vm1, %v1404_v38  ;;  %1319 = vmatmul.msk.bf16.vlgmr.msra.gmra.mxu2 %vm266_vm1, %v1408_v39 }
  0x64   : > { %1348 = vmatmul.msk.bf16.vlgmr.msra.gmra.mxu3 %vm266_vm1, %v1412_v40  ;;  %1377 = vmatmul.msk.bf16.vlgmr.msra.gmra.mxu0 %vm266_vm1, %v1416_v41 }
  0x73   : > { %1299 = vmatmul.msk.bf16.gmra.mxu1 %vm266_vm1, %v1405_v42  ;;  %1320 = vmatmul.msk.bf16.gmra.mxu2 %vm266_vm1, %v1409_v43 }
  0x74   : > { %1349 = vmatmul.msk.bf16.gmra.mxu3 %vm266_vm1, %v1413_v44  ;;  %1378 = vmatmul.msk.bf16.gmra.mxu0 %vm266_vm1, %v1417_v45 }
  0x83   : > { %1300 = vmatmul.msk.bf16.gmra.mxu1 %vm266_vm1, %v1406_v46  ;;  %1321 = vmatmul.msk.bf16.gmra.mxu2 %vm266_vm1, %v1410_v47 }
  0x84   : > { %1350 = vmatmul.msk.bf16.gmra.mxu3 %vm266_vm1, %v1414_v48  ;;  %1379 = vmatmul.msk.bf16.gmra.mxu0 %vm266_vm1, %v1418_v49 }
  0x90   : > { %v297_v52 = vpop.f32.mrf.mxu1 }
  0x91   : > { %v292_v55 = vpop.f32.mrf.mxu0 }
  0x93   : > { %1301 = vmatmul.msk.bf16.gmra.mxu1 %vm266_vm1, %v1407_v50  ;;  %1322 = vmatmul.msk.bf16.gmra.mxu2 %vm266_vm1, %v1411_v51 }
  0x94   : > { %1351 = vmatmul.msk.bf16.gmra.mxu3 %vm266_vm1, %v1415_v53  ;;  %1380 = vmatmul.msk.bf16.gmra.mxu0 %vm266_vm1, %v1419_v54 }
  0x96   : > { %v302_v56 = vpop.f32.mrf.mxu2 }
  0x97   : > { %v1597_v57 = vpop.f32.mrf.mxu3 }
  0x98   : > { %v299_v58 = vpop.f32.mrf.mxu1 }
  0x99   : > { %v294_v59 = vpop.f32.mrf.mxu0 }
  0x9e   : > { %v304_v60 = vpop.f32.mrf.mxu2 }
  0x9f   : > { %v1599_v61 = vpop.f32.mrf.mxu3 }
  0xa0   : > { %v356_v62 = vpop.f32.mrf.mxu1 }
  0xa1   : > { %v357_v63 = vadd.f32 %v356_v62, %v292_v55  ;;  %v597_v0 = vpop.f32.mrf.mxu0 }
  0xa6   : > { %v431_v1 = vpop.f32.mrf.mxu2 }
  0xa7   : > { %v451_v2 = vadd.f32 %v431_v1, %v357_v63  ;;  %v514_v3 = vpop.f32.mrf.mxu3 }
  0xa8   : > { %v358_v4 = vpop.f32.mrf.mxu1 }
  0xa9   : > { %v534_v5 = vadd.f32 %v514_v3, %v451_v2  ;;  %v359_v6 = vadd.f32 %v358_v4, %v294_v59  ;;  %v599_v7 = vpop.f32.mrf.mxu0  ;;  %v1626_v2 = vld [vmem:[%s1724_s2] ss:$0 sm:$0xff] }
  0xab   : > { %v617_v8 = vadd.f32 %v597_v0, %v534_v5 }
  0xae   : > { %v433_v9 = vpop.f32.mrf.mxu2 }
  0xaf   : > { %v452_v10 = vadd.f32 %v433_v9, %v359_v6  ;;  %v516_v11 = vpop.f32.mrf.mxu3 }
  0xb0   : > { %v361_v12 = vpop.f32.mrf.mxu1 }
  0xb1   : > { %v535_v13 = vadd.f32 %v516_v11, %v452_v10  ;;  %v362_v14 = vadd.f32 %v361_v12, %v297_v52  ;;  %v602_v15 = vpop.f32.mrf.mxu0 }
  0xb3   : > { %v618_v16 = vadd.f32 %v599_v7, %v535_v13 }
  0xb6   : > { %v436_v17 = vpop.f32.mrf.mxu2 }
  0xb7   : > { %v453_v18 = vadd.f32 %v436_v17, %v362_v14  ;;  %v519_v19 = vpop.f32.mrf.mxu3 }
  0xb8   : > { %v363_v20 = vpop.f32.mrf.mxu1 }
  0xb9   : > { %v536_v21 = vadd.f32 %v519_v19, %v453_v18  ;;  %v364_v22 = vadd.f32 %v363_v20, %v299_v58  ;;  %v604_v23 = vpop.f32.mrf.mxu0 }
  0xbb   : > { %v619_v24 = vadd.f32 %v602_v15, %v536_v21 }
  0xbe   : > { %v438_v25 = vpop.f32.mrf.mxu2 }
  0xbf   : > { %v454_v26 = vadd.f32 %v438_v25, %v364_v22  ;;  %v521_v27 = vpop.f32.mrf.mxu3 }
  0xc0   : > { %v366_v28 = vpop.f32.mrf.mxu1 }
  0xc1   : > { %v537_v29 = vadd.f32 %v521_v27, %v454_v26  ;;  %v367_v30 = vadd.f32 %v366_v28, %v302_v56  ;;  %v607_v31 = vpop.f32.mrf.mxu0 }
  0xc3   : > { %v1601_v32 = vadd.f32 %v604_v23, %v537_v29 }
  0xc6   : > { %v441_v33 = vpop.f32.mrf.mxu2 }
  0xc7   : > { %v455_v34 = vadd.f32 %v441_v33, %v367_v30  ;;  %v524_v35 = vpop.f32.mrf.mxu3 }
  0xc8   : > { %v368_v36 = vpop.f32.mrf.mxu1 }
  0xc9   : > { %v538_v37 = vadd.f32 %v524_v35, %v455_v34  ;;  %v369_v38 = vadd.f32 %v368_v36, %v304_v60  ;;  %v609_v39 = vpop.f32.mrf.mxu0 }
  0xcb   : > { %v1603_v40 = vadd.f32 %v607_v31, %v538_v37 }
  0xce   : > { %v443_v41 = vpop.f32.mrf.mxu2 }
  0xcf   : > { %v456_v42 = vadd.f32 %v443_v41, %v369_v38  ;;  %v526_v43 = vpop.f32.mrf.mxu3 }
  0xd0   : > { %v1605_v44 = vpop.f32.mrf.mxu1 }
  0xd1   : > { %v539_v45 = vadd.f32 %v526_v43, %v456_v42  ;;  %v1607_v46 = vpop.f32.mrf.mxu0 }
  0xd3   : > { %v1609_v47 = vadd.f32 %v609_v39, %v539_v45 }
  0xd6   : > { %v1611_v48 = vpop.f32.mrf.mxu2 }
  0xd7   : > { %v1613_v49 = vpop.f32.mrf.mxu3 }
  0xd8   : > { %v1615_v50 = vpop.f32.mrf.mxu1 }
  0xd9   : > { %v1617_v51 = vpop.f32.mrf.mxu0 }
  0xde   : > { %v1619_v52 = vpop.f32.mrf.mxu2 }
  0xdf   : > { %v1621_v53 = vpop.f32.mrf.mxu3 }
  0xe0   : > { %v680_v54 = vpop.f32.mrf.mxu1 }
  0xe1   : > { %v926_v55 = vpop.f32.mrf.mxu0  ;;  %v700_v56 = vadd.f32 %v680_v54, %v617_v8 }
  0xe6   : > { %v762_v58 = vpop.f32.mrf.mxu2 }
  0xe7   : > { %v782_v59 = vadd.f32 %v762_v58, %v700_v56  ;;  %v844_v60 = vpop.f32.mrf.mxu3 }
  0xe8   : > { %v682_v62 = vpop.f32.mrf.mxu1 }
  0xe9   : > { %v864_v63 = vadd.f32 %v844_v60, %v782_v59  ;;  %v928_v0 = vpop.f32.mrf.mxu0  ;;  %v701_v3 = vadd.f32 %v682_v62, %v618_v16 }
  0xeb   : > { %v946_v1 = vadd.f32 %v926_v55, %v864_v63 }
  0xed   : > { %v958_v5 = vadd.f32 %v1626_v2, %v946_v1  ;;  %v372_v1 = vadd.f32 %v1605_v44, %v1597_v57 }
  0xee   : > { %v764_v4 = vpop.f32.mrf.mxu2 }
  0xef   : > { %v783_v6 = vadd.f32 %v764_v4, %v701_v3  ;;  %v846_v7 = vpop.f32.mrf.mxu3  ;;  %v1629_v11 = vmax.f32 %v958_v5, 0.0 }
  0xf0   : > { %v685_v9 = vpop.f32.mrf.mxu1 }
  0xf1   : > { %v865_v8 = vadd.f32 %v846_v7, %v783_v6  ;;  %v931_v10 = vpop.f32.mrf.mxu0  ;;  %v702_v14 = vadd.f32 %v685_v9, %v619_v24  ;;  %v996_v17 = vmul.f32 %v1629_v11, %v1629_v11  ;;  %v975_v21 = vsel %vm974_vm2, %v1629_v11, 0.0 }
  0xf2   : > { %v457_v7 = vadd.f32 %v1611_v48, %v372_v1  ;;  %v374_v48 = vadd.f32 %v1615_v50, %v1599_v61 }
  0xf3   : > { %v947_v12 = vadd.f32 %v928_v0, %v865_v8  ;;  %v1004_v27 = vsel %vm974_vm2, %v996_v17, 0.0 }
  0xf4   : > { %v540_v44 = vadd.f32 %v1613_v49, %v457_v7 }
  0xf5   : > { %v959_v13 = vadd.f32 %v1626_v2, %v947_v12 }
  0xf6   : > { %v767_v15 = vpop.f32.mrf.mxu2 }
  0xf7   : > { %v1634_v16 = vmax.f32 %v959_v13, 0.0  ;;  %v784_v18 = vadd.f32 %v767_v15, %v702_v14  ;;  %v849_v19 = vpop.f32.mrf.mxu3 }
  0xf8   : > { %v687_v20 = vpop.f32.mrf.mxu1 }
  0xf9   : > { %v976_v22 = vsel %vm974_vm2, %v1634_v16, 0.0  ;;  %v997_v23 = vmul.f32 %v1634_v16, %v1634_v16  ;;  %v866_v24 = vadd.f32 %v849_v19, %v784_v18  ;;  %v933_v26 = vpop.f32.mrf.mxu0  ;;  %v703_v33 = vadd.f32 %v687_v20, %v1601_v32 }
  0xfa   : > { %v977_v25 = vadd.f32 %v976_v22, %v975_v21  ;;  %v458_v22 = vadd.f32 %v1619_v52, %v374_v48 }
  0xfb   : > { %v1005_v28 = vsel %vm974_vm2, %v997_v23, 0.0  ;;  %v948_v29 = vadd.f32 %v931_v10, %v866_v24  ;;  %v623_v24 = vadd.f32 %v1607_v46, %v540_v44 }
  0xfc   : > { %v1006_v30 = vadd.f32 %v1005_v28, %v1004_v27  ;;  %v541_v50 = vadd.f32 %v1621_v53, %v458_v22 }
  0xfd   : > { %v960_v31 = vadd.f32 %v1626_v2, %v948_v29 }
  0xfe   : > { %v769_v34 = vpop.f32.mrf.mxu2 }
  0xff   : > { %v1646_v35 = vmax.f32 %v960_v31, 0.0  ;;  %v785_v36 = vadd.f32 %v769_v34, %v703_v33  ;;  %v851_v37 = vpop.f32.mrf.mxu3 }
 0x100   : > { %v690_v38 = vpop.f32.mrf.mxu1 }
 0x101   : > { %v978_v39 = vsel %vm974_vm2, %v1646_v35, 0.0  ;;  %v998_v41 = vmul.f32 %v1646_v35, %v1646_v35  ;;  %v867_v42 = vadd.f32 %v851_v37, %v785_v36  ;;  %v936_v56 = vpop.f32.mrf.mxu0  ;;  %v704_v58 = vadd.f32 %v690_v38, %v1603_v40 }
 0x102   : > { %v979_v43 = vadd.f32 %v978_v39, %v977_v25  ;;  %v624_v39 = vadd.f32 %v1617_v51, %v541_v50  ;;  %v1041_v50 = vld [vmem:[%s1725_s3] sm:$0x1] }
 0x103   : > { %v1007_v45 = vsel %vm974_vm2, %v998_v41, 0.0  ;;  %v949_v54 = vadd.f32 %v933_v26, %v867_v42 }
 0x104   : > { %v1008_v55 = vadd.f32 %v1007_v45, %v1006_v30 }
 0x105   : > { %v961_v32 = vadd.f32 %v1626_v2, %v949_v54 }
 0x106   : > { %v772_v59 = vpop.f32.mrf.mxu2 }
 0x107   : > { %v1655_v60 = vmax.f32 %v961_v32, 0.0  ;;  %v786_v62 = vadd.f32 %v772_v59, %v704_v58  ;;  %v854_v63 = vpop.f32.mrf.mxu3 }
 0x108   : > { %v692_v0 = vpop.f32.mrf.mxu1 }
 0x109   : > { %v980_v3 = vsel %vm974_vm2, %v1655_v60, 0.0  ;;  %v999_v4 = vmul.f32 %v1655_v60, %v1655_v60  ;;  %v868_v5 = vadd.f32 %v854_v63, %v786_v62  ;;  %v705_v12 = vadd.f32 %v692_v0, %v1609_v47  ;;  %v938_v13 = vpop.f32.mrf.mxu0 }
 0x10a   : > { %v981_v6 = vadd.f32 %v980_v3, %v979_v43 }
 0x10b   : > { %v1009_v40 = vsel %vm974_vm2, %v999_v4, 0.0  ;;  %v950_v9 = vadd.f32 %v936_v56, %v868_v5 }
 0x10c   : > { %v1010_v8 = vadd.f32 %v1009_v40, %v1008_v55 }
 0x10d   : > { %v962_v10 = vadd.f32 %v1626_v2, %v950_v9 }
 0x10e   : > { %v774_v57 = vpop.f32.mrf.mxu2 }
 0x10f   : > { %v1668_v14 = vmax.f32 %v962_v10, 0.0  ;;  %v787_v15 = vadd.f32 %v774_v57, %v705_v12  ;;  %v856_v17 = vpop.f32.mrf.mxu3 }
 0x110   : > { %v695_v18 = vpop.f32.mrf.mxu1 }
 0x111   : > { %v982_v19 = vsel %vm974_vm2, %v1668_v14, 0.0  ;;  %v1000_v20 = vmul.f32 %v1668_v14, %v1668_v14  ;;  %v869_v21 = vadd.f32 %v856_v17, %v787_v15  ;;  %v706_v27 = vadd.f32 %v695_v18, %v623_v24  ;;  %v941_v31 = vpop.f32.mrf.mxu0 }
 0x112   : > { %v983_v47 = vadd.f32 %v982_v19, %v981_v6 }
 0x113   : > { %v1011_v49 = vsel %vm974_vm2, %v1000_v20, 0.0  ;;  %v951_v23 = vadd.f32 %v938_v13, %v869_v21 }
 0x114   : > { %v1012_v25 = vadd.f32 %v1011_v49, %v1010_v8 }
 0x115   : > { %v963_v26 = vadd.f32 %v1626_v2, %v951_v23 }
 0x116   : > { %v777_v61 = vpop.f32.mrf.mxu2 }
 0x117   : > { %v1681_v28 = vmax.f32 %v963_v26, 0.0  ;;  %v788_v29 = vadd.f32 %v777_v61, %v706_v27  ;;  %v859_v30 = vpop.f32.mrf.mxu3 }
 0x118   : > { %v697_v36 = vpop.f32.mrf.mxu1 }
 0x119   : > { %v984_v52 = vsel %vm974_vm2, %v1681_v28, 0.0  ;;  %v1001_v33 = vmul.f32 %v1681_v28, %v1681_v28  ;;  %v870_v34 = vadd.f32 %v859_v30, %v788_v29  ;;  %v707_v42 = vadd.f32 %v697_v36, %v624_v39  ;;  %v943_v62 = vpop.f32.mrf.mxu0 }
 0x11a   : > { %v985_v46 = vadd.f32 %v984_v52, %v983_v47 }
 0x11b   : > { %v1013_v37 = vsel %vm974_vm2, %v1001_v33, 0.0  ;;  %v952_v38 = vadd.f32 %v941_v31, %v870_v34  ;;  %v1043_v31 = vld [vmem:[%s1726_s4] sm:$0x1] }
 0x11c   : > { %v1014_v53 = vadd.f32 %v1013_v37, %v1012_v25 }
 0x11d   : > { %v964_v41 = vadd.f32 %v1626_v2, %v952_v38 }
 0x11e   : > { %v779_v43 = vpop.f32.mrf.mxu2 }
 0x11f   : > { %v972_v45 = vmax.f32 %v964_v41, 0.0  ;;  %v789_v54 = vadd.f32 %v779_v43, %v707_v42  ;;  %v861_v55 = vpop.f32.mrf.mxu3 }
 0x121   : > { %v986_v56 = vsel %vm974_vm2, %v972_v45, 0.0  ;;  %v1002_v32 = vmul.f32 %v972_v45, %v972_v45  ;;  %v871_v58 = vadd.f32 %v861_v55, %v789_v54 }
 0x122   : > { %v987_v59 = vadd.f32 %v986_v56, %v985_v46 }
 0x123   : > { %v1015_v63 = vsel %vm974_vm2, %v1002_v32, 0.0  ;;  %v953_v0 = vadd.f32 %v943_v62, %v871_v58 }
 0x124   : > { %v1016_v1 = vadd.f32 %v1015_v63, %v1014_v53 }
 0x125   : > { %v965_v51 = vadd.f32 %v1626_v2, %v953_v0 }
 0x127   : > { %v973_v3 = vmax.f32 %v965_v51, 0.0 }
 0x129   : > { %v988_v4 = vsel %vm974_vm2, %v973_v3, 0.0  ;;  %v1003_v5 = vmul.f32 %v973_v3, %v973_v3 }
 0x12a   : > { %v989_v6 = vadd.f32 %v988_v4, %v987_v59 }
 0x12b   : > { %v1017_v7 = vsel %vm974_vm2, %v1003_v5, 0.0 }
 0x12c   : > { %v990_v40 = vrot.slane %v989_v6, 4  ;;  %v1018_v9 = vadd.f32 %v1017_v7, %v1016_v1 }
 0x12e   : > { %v991_v8 = vadd.f32 %v990_v40, %v989_v6  ;;  %v1019_v10 = vrot.slane %v1018_v9, 4 }
 0x130   : > { %v992_v12 = vrot.slane %v991_v8, 2  ;;  %v1020_v13 = vadd.f32 %v1019_v10, %v1018_v9 }
 0x132   : > { %v993_v57 = vadd.f32 %v992_v12, %v991_v8  ;;  %v1021_v44 = vrot.slane %v1020_v13, 2 }
 0x134   : > { %v994_v15 = vrot.slane %v993_v57, 1  ;;  %v1022_v17 = vadd.f32 %v1021_v44, %v1020_v13 }
 0x136   : > { %v995_v18 = vadd.f32 %v994_v15, %v993_v57  ;;  %v1023_v48 = vrot.slane %v1022_v17, 1 }
 0x138   : > { %v1024_v2 = vadd.f32 %v1023_v48, %v1022_v17  ;;  %v1025_v19 = vmul.f32 0.015625, %v995_v18 }
 0x13a   : > { %v1026_v20 = vmul.f32 0.015625, %v1024_v2  ;;  %v1027_v21 = vmul.f32 %v1025_v19, %v1025_v19 }
 0x13c   : > { %v1028_v47 = vsub.f32 %v1026_v20, %v1027_v21 }
 0x13e   : > { %v1029_v22 = vmax.f32 %v1028_v47, 0.0 }
 0x140   : > { %v1030_v49 = vadd.f32 1e-05, %v1029_v22 }
 0x142   : > { %1433 = vrsqrt.f32 %v1030_v49  ;;  %vm1037_vm4 = vweird.f32 %v1030_v49 }
 0x148   : > { %v1434_v23 = vpop.eup %1433 }
 0x149   : > { %v1032_v24 = vmul.f32 %v1434_v23, %v1030_v49  ;;  %vm1038_vm3 = vweird.f32 %v1434_v23 }
 0x14a   : > { %vm1039_vm5 = vmor %vm1037_vm4, %vm1038_vm3 }
 0x14b   : > { %v1033_v25 = vmul.f32 %v1434_v23, %v1032_v24 }
 0x14d   : > { %v1034_v26 = vmul.f32 0.5, %v1033_v25 }
 0x14f   : > { %v1035_v27 = vsub.f32 1.5, %v1034_v26 }
 0x151   : > { %v1036_v61 = vmul.f32 %v1434_v23, %v1035_v27 }
 0x153   : > { %v1040_v29 = vsel %vm1039_vm5, %v1434_v23, %v1036_v61 }
 0x154   : > { %v1042_v30 = vmul.f32 %v1041_v50, %v1040_v29 }
 0x156   : > { %v1044_v52 = vmul.f32 %v1042_v30, %v1025_v19  ;;  %v1046_v33 = vperm.slane %v1042_v30, 0 }
 0x158   : > { %v1045_v34 = vsub.f32 %v1043_v31, %v1044_v52  ;;  %v1047_v46 = vmul.f32 %v1046_v33, %v1629_v11  ;;  %v1048_v36 = vmul.f32 %v1046_v33, %v1634_v16  ;;  %v1049_v37 = vmul.f32 %v1046_v33, %v1646_v35 }
 0x159   : > { %v1050_v38 = vmul.f32 %v1046_v33, %v1655_v60  ;;  %v1051_v39 = vmul.f32 %v1046_v33, %v1668_v14  ;;  %v1052_v53 = vmul.f32 %v1046_v33, %v1681_v28  ;;  %v1053_v41 = vmul.f32 %v1046_v33, %v972_v45 }
 0x15a   : > { %v1054_v42 = vmul.f32 %v1046_v33, %v973_v3  ;;  %v1056_v43 = vperm.slane %v1045_v34, 0 }
 0x15c   : > { %v1058_v54 = vadd.f32 %v1056_v43, %v1047_v46  ;;  %v1059_v55 = vadd.f32 %v1056_v43, %v1048_v36  ;;  %v1060_v11 = vadd.f32 %v1056_v43, %v1049_v37  ;;  %v1061_v56 = vadd.f32 %v1056_v43, %v1050_v38 }
 0x15d   : > { %v1062_v16 = vadd.f32 %v1056_v43, %v1051_v39  ;;  %v1063_v32 = vadd.f32 %v1056_v43, %v1052_v53  ;;  %v1064_v35 = vadd.f32 %v1056_v43, %v1053_v41  ;;  %v1065_v58 = vadd.f32 %v1056_v43, %v1054_v42 }
 0x15e   : > { %1066 = vst.msk [vmem:[%s224_s19] sm:$0xff] %vm974_vm2, %v1058_v54 }
 0x15f   : > { %1067 = vst.msk [vmem:[%s224_s19 + $0x8] sm:$0xff] %vm974_vm2, %v1059_v55 }
 0x160   : > { %1068 = vst.msk [vmem:[%s224_s19 + $0x10] sm:$0xff] %vm974_vm2, %v1060_v11 }
 0x161   : > { %1069 = vst.msk [vmem:[%s224_s19 + $0x18] sm:$0xff] %vm974_vm2, %v1061_v56 }
 0x162   : > { %1070 = vst.msk [vmem:[%s224_s19 + $0x20] sm:$0xff] %vm974_vm2, %v1062_v16 }
 0x163   : > { %1071 = vst.msk [vmem:[%s224_s19 + $0x28] sm:$0xff] %vm974_vm2, %v1063_v32 }
 0x164   : > { %1072 = vst.msk [vmem:[%s224_s19 + $0x30] sm:$0xff] %vm974_vm2, %v1064_v35 }
 0x165   : > { %1073 = vst.msk [vmem:[%s224_s19 + $0x38] sm:$0xff] %vm974_vm2, %v1065_v58 }
 0x166 PF: > { %s15_s18 = sadd.s32 1, %s1441_s18  }
 0x167   : > { %p12_p4 = scmp.ge.s32.totalorder %s15_s18, 4  }
 0x169   :  { %14 = sbr.rel (!%p12_p4) target bundleno = 1 (0x1), region = 83 }

// kernel: multi_scale_downsampling.5
= control target key start
LH: loop header
LB: loop body
LE: loop exit
PB: predicated region body
PF: predicated region fallthrough
CT: control target
= control target key end

     0   :  { %10 = vsyncpa [#allocation3], 0  ;;  %s1135_s0 = inlined_call_operand.vmem [shape: bf16[2,6,6,32], index: 0, kind: input, shape index: {}]   ;;  %s1136_s1 = inlined_call_operand.vmem [shape: bf16[9,32,32], index: 1, kind: input, shape index: {}]   ;;  %s1137_s2 = inlined_call_operand.vmem [shape: f32[1,32], index: 2, kind: input, shape index: {}]   ;;  %s1138_s3 = inlined_call_operand.vmem [shape: f32[1,32], index: 3, kind: input, shape index: {}]   ;;  %s1139_s4 = inlined_call_operand.vmem [shape: f32[1,32], index: 4, kind: input, shape index: {}]   ;;  %s1140_s5 = inlined_call_operand.hbm [shape: f32[2,4,32], index: 5, kind: output, shape index: {}]  }
   0x1   :  { %12 = vsyncpa [#allocation3 + $0x1], 0  ;;  %s964_s18 = smov 0   ;;  %s966_s19 = smov 0  }
   0x2   :  { %s968_s20 = smov 0   ;;  %s970_s21 = smov 0  }
   0x3 LB: > { %s985_s22 = sadd.s32 4294967295, %s932_s21   ;;  %s679_s23 = sadd.s32 4294967294, %s932_s21   ;;  %s932_s21 = sphi %s970_s21, %s1146_s21   ;;  %s928_s20 = sphi %s968_s20, %s1145_s20   ;;  %s924_s19 = sphi %s966_s19, %s1144_s19   ;;  %s920_s18 = sphi %s964_s18, %s1143_s18  }
   0x4   : > { %s989_s24 = sadd.s32 1, %s932_s21   ;;  %s135_s25 = sadd.s32 1, %s928_s20 }
   0x5   : > { %s132_s26 = ssub.s32 %s932_s21, %s989_s24  ;;  %p145_p0 = scmp.ne.s32.totalorder %s928_s20, %s924_s19 }
   0x6   : > { %p133_p1 = scmp.eq.s32.totalorder %s132_s26, 0  ;;  %p146_p2 = scmp.eq.s32.totalorder %s985_s22, 1 }
   0x7   : > { %p151_p3 = scmp.ne.s32.totalorder %s924_s19, %s920_s18  ;;  %p152_p4 = scmp.eq.s32.totalorder %s679_s23, 1 }
   0x8   : > { %s1000_s27 = scalar_select %p133_p1, %s928_s20, %s135_s25  }
   0x9   : > { %p1002_p5 = por %p146_p2, %p145_p0  ;;  %p1006_p6 = por %p152_p4, %p151_p3 }
   0xa   : > { %p682_p7 = scmp.ge.s32.totalorder %s932_s21, 1  ;;  %p190_p8 = scmp.lt.s32.totalorder %s932_s21, 3 }
   0xc   : > { %p191_p9 = pnand %p682_p7, %p190_p8 }
   0xd   : > { %p218_p10 = scmp.lt.s32.totalorder (!%p191_p9), %s985_s22, 1  ;;  %s215_s16 = sand.u32 (!%p191_p9), 1, %s924_s19  }
   0xe   : > { %194 = sbr.rel (%p191_p9) target bundleno = 245 (0xf5), region = 40  ;;  %s683_s25 = sshll.u32 (!%p191_p9), %s215_s16, 2 }
   0xf   : > { %s806_s26 = sshll.u32 (!%p191_p9), %s985_s22, 2  ;;  %s217_s10 = scalar_lea.vmem (!%p191_p9), [#allocation2], %s683_s25 }
  0x10   : > { %s615_s9 = scalar_lea.hbm (!%p191_p9), %s1140_s5, %s806_s26  ;;  %s617_s11 = sshll.u32 (!%p191_p9), %s217_s10, 4  ;;  %s618_s11 = int_to_ptr.vmem [resolvable:$true] %s617_s11 }
  0x11   : > { %s619_s12 = sshll.u32 (!%p191_p9), %s615_s9, 4  ;;  %s890_s23 = scalar_lea.hbm (!%p191_p9), %s1140_s5, 8  ;;  %s620_s12 = int_to_ptr.hbm [resolvable:$true] %s619_s12 }
  0x12   : > { %s884_s14 = sshra.s32 (!%p191_p9), %s620_s12, 4  ;;  %s885_s14 = int_to_ptr.hbm [resolvable:$true] %s884_s14 }
  0x13   : > { %v812_v0 = vld [vmem:[%s1136_s1 + $0x18] sm:$0xff]  ;;  %v810_v1 = vld [vmem:[%s1136_s1 + $0x8] sm:$0xff]  ;;  %v811_v4 = vld [vmem:[%s1136_s1 + $0x10] sm:$0xff]  ;;  %s219_s17 = scalar_select %p218_p10, %s985_s22, 1  ;;  %vm248_vm0 = vcmask 261120   ;;  %vm560_vm1 = vcmask 257024  }
  0x14   : > { %v814_v2 = vld [vmem:[%s1136_s1 + $0x28] sm:$0xff]  ;;  %v816_v3 = vld [vmem:[%s1136_s1 + $0x38] sm:$0xff]  ;;  %258 = vmatpush.bf16.msra.mxu0 %v812_v0  ;;  %286 = vmatpush.bf16.msra.mxu1 %v810_v1  ;;  %v809_v5 = vld [vmem:[%s1136_s1] sm:$0xff]  ;;  %s605_s22 = scalar_lea.sflag [#allocation3], %s215_s16  ;;  %p891_p0 = scmp.lt.s32.totalorder %s885_s14, %s1140_s5 }
  0x15   : > { %321 = vmatpush.bf16.msra.mxu2 %v814_v2  ;;  %357 = vmatpush.bf16.msra.mxu3 %v816_v3  ;;  %v813_v6 = vld [vmem:[%s1136_s1 + $0x20] sm:$0xff]  ;;  %v815_v7 = vld [vmem:[%s1136_s1 + $0x30] sm:$0xff]  ;;  %s827_s6 = smul.u32 24, %s219_s17  ;;  %v818_v8 = vld [vmem:[%s1136_s1 + $0x48] sm:$0xff] }
  0x16   : > { %v822_v9 = vld [vmem:[%s1136_s1 + $0x68] sm:$0xff]  ;;  %v824_v10 = vld [vmem:[%s1136_s1 + $0x78] sm:$0xff]  ;;  %v817_v16 = vld [vmem:[%s1136_s1 + $0x40] sm:$0xff] }
  0x17   : > { %s1047_s13 = scalar_lea.vmem %s1135_s0, %s827_s6  ;;  %v820_v11 = vld [vmem:[%s1136_s1 + $0x58] sm:$0xff]  ;;  %v821_v17 = vld [vmem:[%s1136_s1 + $0x60] sm:$0xff]  ;;  %v826_v18 = vld [vmem:[%s1136_s1 + $0x88] sm:$0xff] }
  0x18   : > { %259 = vmatpush.bf16.msra.mxu0 %v811_v4  ;;  %287 = vmatpush.bf16.msra.mxu1 %v809_v5  ;;  %v685_v12 = vld [vmem:[%s1047_s13 + $0x4] sm:$0x3]  ;;  %v224_v13 = vld [vmem:[%s1047_s13] sm:$0x3]  ;;  %v708_v14 = vld [vmem:[%s1047_s13 + $0x8] sm:$0x3] }
  0x19   : > { %322 = vmatpush.bf16.msra.mxu2 %v813_v6  ;;  %358 = vmatpush.bf16.msra.mxu3 %v815_v7  ;;  %v722_v15 = vld [vmem:[%s1047_s13 + $0xc] sm:$0x3]  ;;  %v823_v19 = vld [vmem:[%s1136_s1 + $0x70] sm:$0xff]  ;;  %v437_v21 = vld [vmem:[%s1047_s13] sm:$0x6] }
  0x1a   : > { %v819_v20 = vld [vmem:[%s1136_s1 + $0x50] sm:$0xff]  ;;  %v777_v22 = vld [vmem:[%s1047_s13 + $0x4] sm:$0x6]  ;;  %v444_v24 = vunpack.c.l.b16 %v437_v21  ;;  %v791_v32 = vld [vmem:[%s1047_s13 + $0x8] sm:$0x6] }
  0x1b   : > { %698 = vmatmul.msk.bf16.vlgmr.msra.gmra.mxu0 %vm248_vm0, %v685_v12  ;;  %707 = vmatmul.msk.bf16.vlgmr.msra.gmra.mxu1 %vm248_vm0, %v224_v13  ;;  %v825_v23 = vld [vmem:[%s1136_s1 + $0x80] sm:$0xff]  ;;  %v483_v25 = vunpack.c.l.b16 %v777_v22  ;;  %v736_v28 = vld [vmem:[%s1047_s13 + $0x10] sm:$0x3]  ;;  %v750_v31 = vld [vmem:[%s1047_s13 + $0x14] sm:$0x3]  ;;  %v522_v33 = vunpack.c.l.b16 %v791_v32  ;;  %s886_s13 = scalar_lea.hbm %s885_s14, 4 }
  0x1c   : > { %393 = vmatpush.bf16.msrb.mxu0 %v818_v8  ;;  %721 = vmatmul.msk.bf16.vlgmr.msra.gmra.mxu2 %vm248_vm0, %v708_v14  ;;  %v445_v26 = vpack.c.b16 %v444_v24, %v444_v24  ;;  %v867_v59 = vld [vmem:[%s1137_s2] ss:$0 sm:$0xff]  ;;  %p887_p11 = scmp.ne.s32.totalorder %s885_s14, %s886_s13  ;;  %p892_p1 = scmp.lt.s32.totalorder %s890_s23, %s886_s13 }
  0x1d   : > { %468 = vmatpush.bf16.msrb.mxu2 %v822_v9  ;;  %735 = vmatmul.msk.bf16.vlgmr.msra.gmra.mxu3 %vm248_vm0, %v722_v15  ;;  %v484_v27 = vpack.c.b16 %v483_v25, %v483_v25  ;;  %v523_v34 = vpack.c.b16 %v522_v33, %v522_v33 }
  0x1e   : > { %507 = vmatpush.bf16.msrb.mxu3 %v824_v10  ;;  %429 = vmatpush.bf16.msrb.mxu1 %v820_v11  ;;  %v446_v29 = vrot.slane %v445_v26, 1  ;;  %p888_p12 = pnand %p887_p11, %p1002_p5  ;;  %p893_p2 = por %p892_p1, %p891_p0 }
  0x1f   : > { %v485_v30 = vrot.slane %v484_v27, 1  ;;  %v524_v35 = vrot.slane %v523_v34, 1 }
  0x20   : > { %394 = vmatpush.bf16.msrb.mxu0 %v817_v16  ;;  %p889_p13 = pneg %p888_p12 }
  0x21   : > { %469 = vmatpush.bf16.msrb.mxu2 %v821_v17 }
  0x22   : > { %508 = vmatpush.bf16.msrb.mxu3 %v823_v19  ;;  %430 = vmatpush.bf16.msrb.mxu1 %v819_v20  ;;  %p894_p3 = pnand %p893_p2, %p889_p13 }
  0x24   : > { %546 = vmatpush.bf16.msra.mxu0 %v826_v18 }
  0x28   : > { %547 = vmatpush.bf16.msra.mxu0 %v825_v23 }
  0x2b   : > { %749 = vmatmul.msk.bf16.vlgmr.msrb.gmra.mxu0 %vm248_vm0, %v736_v28  ;;  %763 = vmatmul.msk.bf16.vlgmr.msrb.gmra.mxu1 %vm248_vm0, %v750_v31  ;;  %v592_v28 = vld [vmem:[%s1138_s3] sm:$0x1] }
  0x2c   : > { %776 = vmatmul.msk.bf16.vlgmr.msrb.gmra.mxu2 %vm248_vm0, %v446_v29  ;;  %v594_v31 = vld [vmem:[%s1139_s4] sm:$0x1] }
  0x2d   : > { %790 = vmatmul.msk.bf16.vlgmr.msrb.gmra.mxu3 %vm248_vm0, %v485_v30 }
  0x3b   : > { %804 = vmatmul.msk.bf16.vlgmr.msra.gmra.mxu0 %vm248_vm0, %v524_v35 }
  0x98   : > { %v261_v36 = vpop.f32.mrf.mxu0  ;;  %v289_v37 = vpop.f32.mrf.mxu1 }
  0x99   : > { %v290_v42 = vadd.f32 %v289_v37, %v261_v36 }
  0x9f   : > { %v324_v38 = vpop.f32.mrf.mxu2 }
  0xa0   : > { %v360_v39 = vpop.f32.mrf.mxu3  ;;  %v263_v40 = vpop.f32.mrf.mxu0  ;;  %v328_v43 = vadd.f32 %v324_v38, %v290_v42 }
  0xa1   : > { %v291_v41 = vpop.f32.mrf.mxu1 }
  0xa2   : > { %v364_v48 = vadd.f32 %v360_v39, %v328_v43 }
  0xa7   : > { %v326_v44 = vpop.f32.mrf.mxu2 }
  0xa8   : > { %v362_v45 = vpop.f32.mrf.mxu3  ;;  %v396_v46 = vpop.f32.mrf.mxu0 }
  0xa9   : > { %v432_v47 = vpop.f32.mrf.mxu1  ;;  %v400_v49 = vadd.f32 %v396_v46, %v364_v48 }
  0xab   : > { %v436_v54 = vadd.f32 %v432_v47, %v400_v49 }
  0xaf   : > { %v471_v50 = vpop.f32.mrf.mxu2 }
  0xb0   : > { %v510_v51 = vpop.f32.mrf.mxu3  ;;  %v398_v52 = vpop.f32.mrf.mxu0  ;;  %v475_v55 = vadd.f32 %v471_v50, %v436_v54 }
  0xb1   : > { %v434_v53 = vpop.f32.mrf.mxu1 }
  0xb2   : > { %v514_v56 = vadd.f32 %v510_v51, %v475_v55 }
  0xb7   : > { %v473_v57 = vpop.f32.mrf.mxu2 }
  0xb8   : > { %v512_v58 = vpop.f32.mrf.mxu3  ;;  %v549_v60 = vpop.f32.mrf.mxu0 }
  0xb9   : > { %v553_v61 = vadd.f32 %v549_v60, %v514_v56 }
  0xbb   : > { %v558_v62 = vadd.f32 %v867_v59, %v553_v61 }
  0xbd   : > { %v559_v63 = vmax.f32 %v558_v62, 0.0 }
  0xbf   : > { %v568_v0 = vmul.f32 %v559_v63, %v559_v63  ;;  %v561_v1 = vsel %vm560_vm1, %v559_v63, 0.0 }
  0xc0   : > { %v551_v2 = vpop.f32.mrf.mxu0  ;;  %v562_v3 = vrot.slane %v561_v1, 4 }
  0xc1   : > { %v569_v4 = vsel %vm560_vm1, %v568_v0, 0.0 }
  0xc2   : > { %v563_v5 = vadd.f32 %v562_v3, %v561_v1  ;;  %v570_v6 = vrot.slane %v569_v4, 4 }
  0xc4   : > { %v564_v7 = vrot.slane %v563_v5, 2  ;;  %v571_v8 = vadd.f32 %v570_v6, %v569_v4 }
  0xc6   : > { %v565_v9 = vadd.f32 %v564_v7, %v563_v5  ;;  %v572_v10 = vrot.slane %v571_v8, 2 }
  0xc8   : > { %v566_v11 = vrot.slane %v565_v9, 1  ;;  %v573_v12 = vadd.f32 %v572_v10, %v571_v8 }
  0xca   : > { %v567_v13 = vadd.f32 %v566_v11, %v565_v9  ;;  %v574_v14 = vrot.slane %v573_v12, 1 }
  0xcc   : > { %v575_v15 = vadd.f32 %v574_v14, %v573_v12  ;;  %v576_v16 = vmul.f32 0.25, %v567_v13 }
  0xce   : > { %v577_v17 = vmul.f32 0.25, %v575_v15  ;;  %v578_v18 = vmul.f32 %v576_v16, %v576_v16 }
  0xd0   : > { %v579_v19 = vsub.f32 %v577_v17, %v578_v18 }
  0xd2   : > { %v580_v20 = vmax.f32 %v579_v19, 0.0 }
  0xd4   : > { %v581_v21 = vadd.f32 1e-05, %v580_v20 }
  0xd6   : > { %868 = vrsqrt.f32 %v581_v21  ;;  %vm588_vm3 = vweird.f32 %v581_v21 }
  0xdc   : > { %v869_v22 = vpop.eup %868 }
  0xdd   : > { %v583_v23 = vmul.f32 %v869_v22, %v581_v21  ;;  %vm589_vm2 = vweird.f32 %v869_v22 }
  0xde   : > { %vm590_vm4 = vmor %vm588_vm3, %vm589_vm2 }
  0xdf   : > { %v584_v24 = vmul.f32 %v869_v22, %v583_v23 }
  0xe1   : > { %v585_v25 = vmul.f32 0.5, %v584_v24 }
  0xe3   : > { %v586_v26 = vsub.f32 1.5, %v585_v25 }
  0xe5   : > { %v587_v27 = vmul.f32 %v869_v22, %v586_v26 }
  0xe7   : > { %v591_v29 = vsel %vm590_vm4, %v869_v22, %v587_v27 }
  0xe8   : > { %v593_v30 = vmul.f32 %v592_v28, %v591_v29 }
  0xea   : > { %v595_v32 = vmul.f32 %v593_v30, %v576_v16  ;;  %v597_v33 = vperm.slane %v593_v30, 0 }
  0xec   : > { %v596_v34 = vsub.f32 %v594_v31, %v595_v32  ;;  %v598_v35 = vmul.f32 %v597_v33, %v559_v63 }
  0xee   : > { %v600_v36 = vperm.slane %v596_v34, 0 }
  0xf0   : > { %v602_v37 = vadd.f32 %v600_v36, %v598_v35 }
  0xf2   : > { %603 = vst.msk [vmem:[%s217_s10] sm:$0xf] %vm560_vm1, %v602_v37 }
  0xf3   : > { %897 = shalt.err (!%p894_p3)
}
  0xf4   : > { %828 = dma.vmem_to_hbm [thread:$0]  (%p1002_p5), %s618_s11, 64, %s620_s12, %s605_s22  }
  0xf5 PF: > { %p834_p4 = scmp.ge.s32.totalorder %s932_s21, 2  ;;  %s631_s16 = sand.u32 1, %s920_s18  }
  0xf6   : > { %s632_s30 = scalar_lea.sflag [#allocation3], %s631_s16 }
  0xf7   : > { %p831_p7 = pnand %p834_p4, %p1006_p6 }
  0xf9   : > { %p832_p8 = pneg %p831_p7 }
  0xfb   : > { %915 = dma.done.wait (%p832_p8), %s632_s30, 64  }
  0xfc   : > { %917 = vsyncadd (%p832_p8), %s632_s30, 4294967232  ;;  %p15_p9 = scmp.ge.s32.totalorder %s989_s24, 4   ;;  %s1143_s18 = smov %s924_s19 }
  0xfd   : > { %s1144_s19 = smov %s928_s20  ;;  %s1145_s20 = smov %s1000_s27 }
  0xfe   : > { %s1146_s21 = smov %s989_s24  ;;  %17 = sbr.rel (!%p15_p9) target bundleno = 3 (0x3), region = 88 }
 0x103   :  { %638 = vsyncpa [#allocation3], 1 }
 0x104   :  { %640 = vsyncpa [#allocation3 + $0x1], 1 }

</bundles_post_ra>
